<compile_context>
chip_gen: v5e
topology: v5e:2x2
jax: 0.10.0
libtpu: 0.0.40
codegen_flags: <defaults>
</compile_context>

<pallas_src>
import numpy as np
import jax
import jax.numpy as jnp
from jax.experimental import pallas as pl
from jax.experimental.pallas import tpu as pltpu

# Make the f32 matmul path fully f32-accurate everywhere (kernel + any JAX use)
# so the f32 kernel can be checked tightly against a float64 numpy reference.
jax.config.update("jax_default_matmul_precision", "highest")

LOG2PI = float(np.log(2.0 * np.pi))
MIX_W = (3.0 / 20.0, 3.0 / 4.0, 1.0 / 10.0)   # mixture_weights
LN_EPS = 0.1                                   # LayerNorm eps used by Encoder
LOGVAR_UNIFORM = 10.0                          # logvar_uniform_prior fill
# mu_prior / logvar_prior are zero-filled -> folded into these constants.
_C_STND = -0.5 * LOG2PI + float(np.log(MIX_W[0]))
_LOG_W1 = float(np.log(MIX_W[1]))
_C_UNIF = -0.5 * (LOGVAR_UNIFORM + LOG2PI) + float(np.log(MIX_W[2]))
_A_UNIF = -0.5 * float(np.exp(-LOGVAR_UNIFORM))


# ---------------------------------------------------------------------------
# kernel
# ---------------------------------------------------------------------------
def composite_prior_kernel(x_ref, z_ref, w1, b1, wh, bh, g, be,
                           wmu, bmu, wlv, blv, out_ref):
    x = x_ref[...]
    z = z_ref[...]

    # x / ||x|| with rsqrt instead of divide-by-sqrt.  The tiny floor only
    # protects all-zero padded batch rows, which the wrapper slices off.
    sumsq = jnp.sum(x * x, axis=-1, keepdims=True)
    xn = x * jax.lax.rsqrt(jnp.maximum(sumsq, 1e-30))
    # dropout_rate == 0 in CompositePrior -> dropout is the identity.

    def matmul(a, w):
        # w may be bf16 (MXU fast path on v6e/v7x); always accumulate in f32.
        return jnp.dot(a.astype(w.dtype), w, preferred_element_type=jnp.float32)

    def swish(v):
        return v * jax.nn.sigmoid(v)

    def layernorm(v, k):
        # Two-pass (centered) statistics: no E[x^2]-E[x]^2 cancellation.
        inv_n = 1.0 / v.shape[-1]
        mean = jnp.sum(v, axis=-1, keepdims=True) * inv_n
        d = v - mean
        var = jnp.sum(d * d, axis=-1, keepdims=True) * inv_n
        return d * jax.lax.rsqrt(var + LN_EPS) * g[k] + be[k]

    # layer 1
    h = layernorm(swish(matmul(xn, w1[...]) + b1[...]), 0)
    acc = h                                    # running residual h1 + ... + hk
    # layers 2..5 with the running residual accumulator
    for k in range(4):
        pre = matmul(h, wh[k]) + bh[k] + acc
        h = layernorm(swish(pre), k + 1)
        if k < 3:
            acc = acc + h

    post_mu = matmul(h, wmu[...]) + bmu[...]
    post_logvar = matmul(h, wlv[...]) + blv[...]

    # mixture log-densities (log_norm_pdf with constant terms folded)
    z2 = z * z
    stnd = -0.5 * z2 + _C_STND
    diff = z - post_mu
    post = (-0.5 * (post_logvar + LOG2PI + diff * diff * jnp.exp(-post_logvar))
            + _LOG_W1)
    unif = _A_UNIF * z2 + _C_UNIF

    # logsumexp over the 3 mixture components
    m = jnp.maximum(jnp.maximum(stnd, post), unif)
    out_ref[...] = m + jnp.log(
        jnp.exp(stnd - m) + jnp.exp(post - m) + jnp.exp(unif - m))


# ---------------------------------------------------------------------------
# wrapper
# ---------------------------------------------------------------------------
def _round_up(n, m):
    return ((n + m - 1) // m) * m


def pack_params(flat, matmul_dtype=jnp.float32):
    """flat: [w1,b1,g1,be1, ..., w5,b5,g5,be5, wmu,bmu,wlv,blv].
    Weights are pre-transposed to [in, out]; biases / LN params are [1, F].
    `matmul_dtype=jnp.bfloat16` enables the MXU-operand fast path (v6e/v7x);
    biases / LN params stay f32 either way."""
    (w1, b1, g1, be1, w2, b2, g2, be2, w3, b3, g3, be3,
     w4, b4, g4, be4, w5, b5, g5, be5, wmu, bmu, wlv, blv) = flat
    cast = lambda w: w.astype(matmul_dtype)
    wh = jnp.stack([w2, w3, w4, w5], axis=0).astype(matmul_dtype)  # [4, H, H]
    bh = jnp.stack([b2, b3, b4, b5], axis=0)                       # [4, 1, H]
    g = jnp.stack([g1, g2, g3, g4, g5], axis=0)                    # [5, 1, H]
    be = jnp.stack([be1, be2, be3, be4, be5], axis=0)              # [5, 1, H]
    return (cast(w1), b1, wh, bh, g, be, cast(wmu), bmu, cast(wlv), blv)


def composite_prior(x, z, packed, *, tile_b=4096):
    """CompositePrior.forward; returns log mixture density of shape [B, L]."""
    w1, b1, wh, bh, g, be, wmu, bmu, wlv, blv = packed
    B, lat = z.shape
    in_dim = x.shape[1]
    hid = w1.shape[1]

    # ---- batch tiling ------------------------------------------------------
    b8 = _round_up(max(B, 1), 8)
    n_steps = max(1, -(-b8 // max(tile_b, 8)))
    if b8 > 16:
        n_steps = max(n_steps, 2)          # >= 2 grid steps keeps both v7x TCs busy
    tb = _round_up(-(-b8 // n_steps), 8)   # large tiles amortize per-step overhead
    b_pad = tb * n_steps
    if b_pad != B:
        x = jnp.pad(x, ((0, b_pad - B), (0, 0)))
        z = jnp.pad(z, ((0, b_pad - B), (0, 0)))

    # ---- VMEM budget: double-buffered x/z/out tiles + ~6 live activations ---
    weight_bytes = sum(int(np.prod(p.shape)) * p.dtype.itemsize for p in packed)
    est = 4 * tb * (2 * in_dim + 4 * lat + 8 * hid) + weight_bytes + (2 << 20)
    # >= 32 MiB so v5e's 16-MiB default never forces tiny tiles; <= 60 MiB so
    # we stay under v7x's 64-MiB physical VMEM.
    vmem_limit = int(min(max(est, 32 << 20), 60 << 20))

    def tiled(shape):        # batch-streamed operands
        return pl.BlockSpec(shape,
                            lambda i, _nd=len(shape): (i,) + (0,) * (_nd - 1))

    def resident(shape):     # same block every step -> stays VMEM-resident
        return pl.BlockSpec(shape, lambda i, _nd=len(shape): (0,) * _nd)

    out = pl.pallas_call(
        composite_prior_kernel,
        out_shape=jax.ShapeDtypeStruct((b_pad, lat), jnp.float32),
        grid=(n_steps,),
        in_specs=[
            tiled((tb, in_dim)),
            tiled((tb, lat)),
            resident(w1.shape), resident(b1.shape),
            resident(wh.shape), resident(bh.shape),
            resident(g.shape), resident(be.shape),
            resident(wmu.shape), resident(bmu.shape),
            resident(wlv.shape), resident(blv.shape),
        ],
        out_specs=tiled((tb, lat)),
        compiler_params=pltpu.CompilerParams(
            dimension_semantics=("parallel",),
            vmem_limit_bytes=vmem_limit),
    )(x, z, w1, b1, wh, bh, g, be, wmu, bmu, wlv, blv)
    return out[:B]


# ---------------------------------------------------------------------------
# float64 numpy reference (mirrors the PyTorch forward, precision-independent)
# ---------------------------------------------------------------------------
def _sigmoid_np(v):
    return 1.0 / (1.0 + np.exp(-v))


def _swish_np(v):
    return v * _sigmoid_np(v)


def _layernorm_np(v, gamma, beta):
    mean = v.mean(-1, keepdims=True)
    var = ((v - mean) ** 2).mean(-1, keepdims=True)
    return (v - mean) / np.sqrt(var + LN_EPS) * gamma + beta


def _reference(x, z, params):
    p = [np.asarray(t, dtype=np.float64) for t in params]
    (w1, b1, g1, be1, w2, b2, g2, be2, w3, b3, g3, be3,
     w4, b4, g4, be4, w5, b5, g5, be5, wmu, bmu, wlv, blv) = p
    x = np.asarray(x, np.float64)
    z = np.asarray(z, np.float64)

    xn = x / np.sqrt((x * x).sum(-1, keepdims=True))
    h1 = _layernorm_np(_swish_np(xn @ w1 + b1), g1, be1)
    h2 = _layernorm_np(_swish_np(h1 @ w2 + b2 + h1), g2, be2)
    h3 = _layernorm_np(_swish_np(h2 @ w3 + b3 + h1 + h2), g3, be3)
    h4 = _layernorm_np(_swish_np(h3 @ w4 + b4 + h1 + h2 + h3), g4, be4)
    h5 = _layernorm_np(_swish_np(h4 @ w5 + b5 + h1 + h2 + h3 + h4), g5, be5)
    mu = h5 @ wmu + bmu
    lv = h5 @ wlv + blv

    def log_norm_pdf(zz, mm, lvv):
        return -0.5 * (lvv + LOG2PI + (zz - mm) ** 2 / np.exp(lvv))

    stnd = log_norm_pdf(z, 0.0, np.zeros_like(z)) + np.log(MIX_W[0])
    post = log_norm_pdf(z, mu, lv) + np.log(MIX_W[1])
    unif = log_norm_pdf(z, 0.0, np.full_like(z, LOGVAR_UNIFORM)) + np.log(MIX_W[2])
    m = np.maximum(np.maximum(stnd, post), unif)
    return m + np.log(np.exp(stnd - m) + np.exp(post - m) + np.exp(unif - m))


if __name__ == "__main__":
    BATCH, INPUT_DIM, HIDDEN_DIM, LATENT_DIM = 8, 64, 32, 16

    root = jax.random.PRNGKey(0)
    kparam, kdata = jax.random.split(root)
    keys = jax.random.split(kparam, 14)
    ki = iter(keys)

    def linear_params(in_d, out_d):
        w = (jax.random.normal(next(ki), (in_d, out_d), jnp.float32)
             * (1.0 / np.sqrt(in_d)))
        b = jax.random.normal(next(ki), (1, out_d), jnp.float32) * 0.01
        return w, b

    params = []
    for d_in in [INPUT_DIM] + [HIDDEN_DIM] * 4:   # fc1..fc5 + ln1..ln5
        w, b = linear_params(d_in, HIDDEN_DIM)
        params += [w, b,
                   jnp.ones((1, HIDDEN_DIM), jnp.float32),    # LN gamma default
                   jnp.zeros((1, HIDDEN_DIM), jnp.float32)]   # LN beta default
    wmu, bmu = linear_params(HIDDEN_DIM, LATENT_DIM)
    wlv, blv = linear_params(HIDDEN_DIM, LATENT_DIM)
    params += [wmu, bmu, wlv, blv]
    # TODO(synk): sub1/sub2 inputs of the PyTorch forward are unused by the
    # returned value (their encoder branches are discarded), so they are omitted.

    kx, kz, kx2, kz2 = jax.random.split(kdata, 4)
    x = jax.random.normal(kx, (BATCH, INPUT_DIM), jnp.float32)
    z = jax.random.normal(kz, (BATCH, LATENT_DIM), jnp.float32)

    packed = pack_params(params)                       # f32 exactness mode
    out = jax.block_until_ready(composite_prior(x, z, packed))
    np.testing.assert_allclose(np.asarray(out), _reference(x, z, params),
                               rtol=2e-3, atol=2e-3)

    # multi-step grid + batch-padding path (exercises >=2 grid steps)
    B2 = 200
    x2 = jax.random.normal(kx2, (B2, INPUT_DIM), jnp.float32)
    z2 = jax.random.normal(kz2, (B2, LATENT_DIM), jnp.float32)
    out2 = jax.block_until_ready(composite_prior(x2, z2, packed, tile_b=64))
    ref2 = _reference(x2, z2, params)
    np.testing.assert_allclose(np.asarray(out2), ref2, rtol=2e-3, atol=2e-3)

    # bf16 MXU-operand fast path (v6e/v7x production mode) — looser tolerance
    packed_bf16 = pack_params(params, matmul_dtype=jnp.bfloat16)
    out3 = np.asarray(jax.block_until_ready(composite_prior(x2, z2, packed_bf16)))
    assert np.all(np.isfinite(out3))
    np.testing.assert_allclose(out3, ref2, rtol=5e-2, atol=3e-1)

    print("KERNEL_OK")
</pallas_src>

<mosaic_0001>
module attributes {stable_mosaic.version = 11 : i64} {
  func.func @composite_prior_kernel(%arg0: i32, %arg1: memref<8x64xf32, #tpu.memory_space<vmem>>, %arg2: memref<8x16xf32, #tpu.memory_space<vmem>>, %arg3: memref<64x32xf32, #tpu.memory_space<vmem>>, %arg4: memref<1x32xf32, #tpu.memory_space<vmem>>, %arg5: memref<4x32x32xf32, #tpu.memory_space<vmem>>, %arg6: memref<4x1x32xf32, #tpu.memory_space<vmem>>, %arg7: memref<5x1x32xf32, #tpu.memory_space<vmem>>, %arg8: memref<5x1x32xf32, #tpu.memory_space<vmem>>, %arg9: memref<32x16xf32, #tpu.memory_space<vmem>>, %arg10: memref<1x16xf32, #tpu.memory_space<vmem>>, %arg11: memref<32x16xf32, #tpu.memory_space<vmem>>, %arg12: memref<1x16xf32, #tpu.memory_space<vmem>>, %arg13: memref<8x16xf32, #tpu.memory_space<vmem>>) attributes {dimension_semantics = [#tpu.dimension_semantics<parallel>], iteration_bounds = array<i64: 1>, scalar_prefetch = 0 : i64, scratch_operands = 0 : i64, tpu.core_type = #tpu.core_type<tc>, window_params = [{transform_indices = @transform_0, window_bounds = array<i64: 8, 64>}, {transform_indices = @transform_1, window_bounds = array<i64: 8, 16>}, {pipeline_mode = #tpu.pipeline_mode<synchronous>, transform_indices = @transform_2, window_bounds = array<i64: 64, 32>}, {pipeline_mode = #tpu.pipeline_mode<synchronous>, transform_indices = @transform_3, window_bounds = array<i64: 1, 32>}, {pipeline_mode = #tpu.pipeline_mode<synchronous>, transform_indices = @transform_4, window_bounds = array<i64: 4, 32, 32>}, {pipeline_mode = #tpu.pipeline_mode<synchronous>, transform_indices = @transform_5, window_bounds = array<i64: 4, 1, 32>}, {pipeline_mode = #tpu.pipeline_mode<synchronous>, transform_indices = @transform_6, window_bounds = array<i64: 5, 1, 32>}, {pipeline_mode = #tpu.pipeline_mode<synchronous>, transform_indices = @transform_7, window_bounds = array<i64: 5, 1, 32>}, {pipeline_mode = #tpu.pipeline_mode<synchronous>, transform_indices = @transform_8, window_bounds = array<i64: 32, 16>}, {pipeline_mode = #tpu.pipeline_mode<synchronous>, transform_indices = @transform_9, window_bounds = array<i64: 1, 16>}, {pipeline_mode = #tpu.pipeline_mode<synchronous>, transform_indices = @transform_10, window_bounds = array<i64: 32, 16>}, {pipeline_mode = #tpu.pipeline_mode<synchronous>, transform_indices = @transform_11, window_bounds = array<i64: 1, 16>}, {transform_indices = @transform_12, window_bounds = array<i64: 8, 16>}]} {
    %c0 = arith.constant 0 : index
    %c0_0 = arith.constant 0 : index
    %0 = vector.load %arg1[%c0, %c0_0] : memref<8x64xf32, #tpu.memory_space<vmem>>, vector<8x64xf32>
    %c0_1 = arith.constant 0 : index
    %c0_2 = arith.constant 0 : index
    %1 = vector.load %arg2[%c0_1, %c0_2] : memref<8x16xf32, #tpu.memory_space<vmem>>, vector<8x16xf32>
    %2 = arith.mulf %0, %0 : vector<8x64xf32>
    %cst = arith.constant dense<0.000000e+00> : vector<8xf32>
    %3 = vector.multi_reduction <add>, %2, %cst [1] : vector<8x64xf32> to vector<8xf32>
    %4 = vector.shape_cast %3 : vector<8xf32> to vector<8x1xf32>
    %cst_3 = arith.constant 1.000000e-30 : f32
    %5 = vector.broadcast %cst_3 : f32 to vector<8x1xf32>
    %6 = arith.maximumf %4, %5 : vector<8x1xf32>
    %7 = math.rsqrt %6 : vector<8x1xf32>
    %8 = vector.broadcast %7 : vector<8x1xf32> to vector<8x64xf32>
    %9 = arith.mulf %0, %8 : vector<8x64xf32>
    %c0_4 = arith.constant 0 : index
    %c0_5 = arith.constant 0 : index
    %10 = vector.load %arg3[%c0_4, %c0_5] : memref<64x32xf32, #tpu.memory_space<vmem>>, vector<64x32xf32>
    %cst_6 = arith.constant dense<0.000000e+00> : vector<8x32xf32>
    %11 = tpu.matmul %9, %10, %cst_6 {dimension_numbers = #tpu.dot_dimension_numbers<[1], [0], [0], [1], [0, 0, 1, 1], [], []>, precision = #tpu.contract_precision<fp32>} : vector<8x64xf32>, vector<64x32xf32>, vector<8x32xf32> -> vector<8x32xf32>
    %c0_7 = arith.constant 0 : index
    %c0_8 = arith.constant 0 : index
    %12 = vector.load %arg4[%c0_7, %c0_8] : memref<1x32xf32, #tpu.memory_space<vmem>>, vector<1x32xf32>
    %13 = vector.broadcast %12 : vector<1x32xf32> to vector<8x32xf32>
    %14 = arith.addf %11, %13 : vector<8x32xf32>
    %15 = arith.negf %14 : vector<8x32xf32>
    %16 = math.exp %15 : vector<8x32xf32>
    %cst_9 = arith.constant 1.000000e+00 : f32
    %17 = vector.broadcast %cst_9 : f32 to vector<8x32xf32>
    %18 = arith.addf %17, %16 : vector<8x32xf32>
    %19 = arith.divf %17, %18 : vector<8x32xf32>
    %20 = arith.mulf %14, %19 : vector<8x32xf32>
    %cst_10 = arith.constant dense<0.000000e+00> : vector<8xf32>
    %21 = vector.multi_reduction <add>, %20, %cst_10 [1] : vector<8x32xf32> to vector<8xf32>
    %22 = vector.shape_cast %21 : vector<8xf32> to vector<8x1xf32>
    %cst_11 = arith.constant 3.125000e-02 : f32
    %23 = vector.broadcast %cst_11 : f32 to vector<8x1xf32>
    %24 = arith.mulf %22, %23 : vector<8x1xf32>
    %25 = vector.broadcast %24 : vector<8x1xf32> to vector<8x32xf32>
    %26 = arith.subf %20, %25 : vector<8x32xf32>
    %27 = arith.mulf %26, %26 : vector<8x32xf32>
    %cst_12 = arith.constant dense<0.000000e+00> : vector<8xf32>
    %28 = vector.multi_reduction <add>, %27, %cst_12 [1] : vector<8x32xf32> to vector<8xf32>
    %29 = vector.shape_cast %28 : vector<8xf32> to vector<8x1xf32>
    %cst_13 = arith.constant 3.125000e-02 : f32
    %30 = vector.broadcast %cst_13 : f32 to vector<8x1xf32>
    %31 = arith.mulf %29, %30 : vector<8x1xf32>
    %cst_14 = arith.constant 1.000000e-01 : f32
    %32 = vector.broadcast %cst_14 : f32 to vector<8x1xf32>
    %33 = arith.addf %31, %32 : vector<8x1xf32>
    %34 = math.rsqrt %33 : vector<8x1xf32>
    %35 = vector.broadcast %34 : vector<8x1xf32> to vector<8x32xf32>
    %36 = arith.mulf %26, %35 : vector<8x32xf32>
    %c0_15 = arith.constant 0 : index
    %c0_16 = arith.constant 0 : index
    %c0_17 = arith.constant 0 : index
    %37 = vector.load %arg7[%c0_15, %c0_16, %c0_17] : memref<5x1x32xf32, #tpu.memory_space<vmem>>, vector<1x1x32xf32>
    %38 = vector.shape_cast %37 : vector<1x1x32xf32> to vector<1x32xf32>
    %39 = vector.broadcast %38 : vector<1x32xf32> to vector<8x32xf32>
    %40 = arith.mulf %36, %39 : vector<8x32xf32>
    %c0_18 = arith.constant 0 : index
    %c0_19 = arith.constant 0 : index
    %c0_20 = arith.constant 0 : index
    %41 = vector.load %arg8[%c0_18, %c0_19, %c0_20] : memref<5x1x32xf32, #tpu.memory_space<vmem>>, vector<1x1x32xf32>
    %42 = vector.shape_cast %41 : vector<1x1x32xf32> to vector<1x32xf32>
    %43 = vector.broadcast %42 : vector<1x32xf32> to vector<8x32xf32>
    %44 = arith.addf %40, %43 : vector<8x32xf32>
    %c0_21 = arith.constant 0 : index
    %c0_22 = arith.constant 0 : index
    %c0_23 = arith.constant 0 : index
    %45 = vector.load %arg5[%c0_21, %c0_22, %c0_23] : memref<4x32x32xf32, #tpu.memory_space<vmem>>, vector<1x32x32xf32>
    %46 = vector.shape_cast %45 : vector<1x32x32xf32> to vector<32x32xf32>
    %cst_24 = arith.constant dense<0.000000e+00> : vector<8x32xf32>
    %47 = tpu.matmul %44, %46, %cst_24 {dimension_numbers = #tpu.dot_dimension_numbers<[1], [0], [0], [1], [0, 0, 1, 1], [], []>, precision = #tpu.contract_precision<fp32>} : vector<8x32xf32>, vector<32x32xf32>, vector<8x32xf32> -> vector<8x32xf32>
    %c0_25 = arith.constant 0 : index
    %c0_26 = arith.constant 0 : index
    %c0_27 = arith.constant 0 : index
    %48 = vector.load %arg6[%c0_25, %c0_26, %c0_27] : memref<4x1x32xf32, #tpu.memory_space<vmem>>, vector<1x1x32xf32>
    %49 = vector.shape_cast %48 : vector<1x1x32xf32> to vector<1x32xf32>
    %50 = vector.broadcast %49 : vector<1x32xf32> to vector<8x32xf32>
    %51 = arith.addf %47, %50 : vector<8x32xf32>
    %52 = arith.addf %51, %44 : vector<8x32xf32>
    %53 = arith.negf %52 : vector<8x32xf32>
    %54 = math.exp %53 : vector<8x32xf32>
    %cst_28 = arith.constant 1.000000e+00 : f32
    %55 = vector.broadcast %cst_28 : f32 to vector<8x32xf32>
    %56 = arith.addf %55, %54 : vector<8x32xf32>
    %57 = arith.divf %55, %56 : vector<8x32xf32>
    %58 = arith.mulf %52, %57 : vector<8x32xf32>
    %cst_29 = arith.constant dense<0.000000e+00> : vector<8xf32>
    %59 = vector.multi_reduction <add>, %58, %cst_29 [1] : vector<8x32xf32> to vector<8xf32>
    %60 = vector.shape_cast %59 : vector<8xf32> to vector<8x1xf32>
    %cst_30 = arith.constant 3.125000e-02 : f32
    %61 = vector.broadcast %cst_30 : f32 to vector<8x1xf32>
    %62 = arith.mulf %60, %61 : vector<8x1xf32>
    %63 = vector.broadcast %62 : vector<8x1xf32> to vector<8x32xf32>
    %64 = arith.subf %58, %63 : vector<8x32xf32>
    %65 = arith.mulf %64, %64 : vector<8x32xf32>
    %cst_31 = arith.constant dense<0.000000e+00> : vector<8xf32>
    %66 = vector.multi_reduction <add>, %65, %cst_31 [1] : vector<8x32xf32> to vector<8xf32>
    %67 = vector.shape_cast %66 : vector<8xf32> to vector<8x1xf32>
    %cst_32 = arith.constant 3.125000e-02 : f32
    %68 = vector.broadcast %cst_32 : f32 to vector<8x1xf32>
    %69 = arith.mulf %67, %68 : vector<8x1xf32>
    %cst_33 = arith.constant 1.000000e-01 : f32
    %70 = vector.broadcast %cst_33 : f32 to vector<8x1xf32>
    %71 = arith.addf %69, %70 : vector<8x1xf32>
    %72 = math.rsqrt %71 : vector<8x1xf32>
    %73 = vector.broadcast %72 : vector<8x1xf32> to vector<8x32xf32>
    %74 = arith.mulf %64, %73 : vector<8x32xf32>
    %c1 = arith.constant 1 : index
    %c0_34 = arith.constant 0 : index
    %c0_35 = arith.constant 0 : index
    %75 = vector.load %arg7[%c1, %c0_34, %c0_35] : memref<5x1x32xf32, #tpu.memory_space<vmem>>, vector<1x1x32xf32>
    %76 = vector.shape_cast %75 : vector<1x1x32xf32> to vector<1x32xf32>
    %77 = vector.broadcast %76 : vector<1x32xf32> to vector<8x32xf32>
    %78 = arith.mulf %74, %77 : vector<8x32xf32>
    %c1_36 = arith.constant 1 : index
    %c0_37 = arith.constant 0 : index
    %c0_38 = arith.constant 0 : index
    %79 = vector.load %arg8[%c1_36, %c0_37, %c0_38] : memref<5x1x32xf32, #tpu.memory_space<vmem>>, vector<1x1x32xf32>
    %80 = vector.shape_cast %79 : vector<1x1x32xf32> to vector<1x32xf32>
    %81 = vector.broadcast %80 : vector<1x32xf32> to vector<8x32xf32>
    %82 = arith.addf %78, %81 : vector<8x32xf32>
    %83 = arith.addf %44, %82 : vector<8x32xf32>
    %c1_39 = arith.constant 1 : index
    %c0_40 = arith.constant 0 : index
    %c0_41 = arith.constant 0 : index
    %84 = vector.load %arg5[%c1_39, %c0_40, %c0_41] : memref<4x32x32xf32, #tpu.memory_space<vmem>>, vector<1x32x32xf32>
    %85 = vector.shape_cast %84 : vector<1x32x32xf32> to vector<32x32xf32>
    %cst_42 = arith.constant dense<0.000000e+00> : vector<8x32xf32>
    %86 = tpu.matmul %82, %85, %cst_42 {dimension_numbers = #tpu.dot_dimension_numbers<[1], [0], [0], [1], [0, 0, 1, 1], [], []>, precision = #tpu.contract_precision<fp32>} : vector<8x32xf32>, vector<32x32xf32>, vector<8x32xf32> -> vector<8x32xf32>
    %c1_43 = arith.constant 1 : index
    %c0_44 = arith.constant 0 : index
    %c0_45 = arith.constant 0 : index
    %87 = vector.load %arg6[%c1_43, %c0_44, %c0_45] : memref<4x1x32xf32, #tpu.memory_space<vmem>>, vector<1x1x32xf32>
    %88 = vector.shape_cast %87 : vector<1x1x32xf32> to vector<1x32xf32>
    %89 = vector.broadcast %88 : vector<1x32xf32> to vector<8x32xf32>
    %90 = arith.addf %86, %89 : vector<8x32xf32>
    %91 = arith.addf %90, %83 : vector<8x32xf32>
    %92 = arith.negf %91 : vector<8x32xf32>
    %93 = math.exp %92 : vector<8x32xf32>
    %cst_46 = arith.constant 1.000000e+00 : f32
    %94 = vector.broadcast %cst_46 : f32 to vector<8x32xf32>
    %95 = arith.addf %94, %93 : vector<8x32xf32>
    %96 = arith.divf %94, %95 : vector<8x32xf32>
    %97 = arith.mulf %91, %96 : vector<8x32xf32>
    %cst_47 = arith.constant dense<0.000000e+00> : vector<8xf32>
    %98 = vector.multi_reduction <add>, %97, %cst_47 [1] : vector<8x32xf32> to vector<8xf32>
    %99 = vector.shape_cast %98 : vector<8xf32> to vector<8x1xf32>
    %cst_48 = arith.constant 3.125000e-02 : f32
    %100 = vector.broadcast %cst_48 : f32 to vector<8x1xf32>
    %101 = arith.mulf %99, %100 : vector<8x1xf32>
    %102 = vector.broadcast %101 : vector<8x1xf32> to vector<8x32xf32>
    %103 = arith.subf %97, %102 : vector<8x32xf32>
    %104 = arith.mulf %103, %103 : vector<8x32xf32>
    %cst_49 = arith.constant dense<0.000000e+00> : vector<8xf32>
    %105 = vector.multi_reduction <add>, %104, %cst_49 [1] : vector<8x32xf32> to vector<8xf32>
    %106 = vector.shape_cast %105 : vector<8xf32> to vector<8x1xf32>
    %cst_50 = arith.constant 3.125000e-02 : f32
    %107 = vector.broadcast %cst_50 : f32 to vector<8x1xf32>
    %108 = arith.mulf %106, %107 : vector<8x1xf32>
    %cst_51 = arith.constant 1.000000e-01 : f32
    %109 = vector.broadcast %cst_51 : f32 to vector<8x1xf32>
    %110 = arith.addf %108, %109 : vector<8x1xf32>
    %111 = math.rsqrt %110 : vector<8x1xf32>
    %112 = vector.broadcast %111 : vector<8x1xf32> to vector<8x32xf32>
    %113 = arith.mulf %103, %112 : vector<8x32xf32>
    %c2 = arith.constant 2 : index
    %c0_52 = arith.constant 0 : index
    %c0_53 = arith.constant 0 : index
    %114 = vector.load %arg7[%c2, %c0_52, %c0_53] : memref<5x1x32xf32, #tpu.memory_space<vmem>>, vector<1x1x32xf32>
    %115 = vector.shape_cast %114 : vector<1x1x32xf32> to vector<1x32xf32>
    %116 = vector.broadcast %115 : vector<1x32xf32> to vector<8x32xf32>
    %117 = arith.mulf %113, %116 : vector<8x32xf32>
    %c2_54 = arith.constant 2 : index
    %c0_55 = arith.constant 0 : index
    %c0_56 = arith.constant 0 : index
    %118 = vector.load %arg8[%c2_54, %c0_55, %c0_56] : memref<5x1x32xf32, #tpu.memory_space<vmem>>, vector<1x1x32xf32>
    %119 = vector.shape_cast %118 : vector<1x1x32xf32> to vector<1x32xf32>
    %120 = vector.broadcast %119 : vector<1x32xf32> to vector<8x32xf32>
    %121 = arith.addf %117, %120 : vector<8x32xf32>
    %122 = arith.addf %83, %121 : vector<8x32xf32>
    %c2_57 = arith.constant 2 : index
    %c0_58 = arith.constant 0 : index
    %c0_59 = arith.constant 0 : index
    %123 = vector.load %arg5[%c2_57, %c0_58, %c0_59] : memref<4x32x32xf32, #tpu.memory_space<vmem>>, vector<1x32x32xf32>
    %124 = vector.shape_cast %123 : vector<1x32x32xf32> to vector<32x32xf32>
    %cst_60 = arith.constant dense<0.000000e+00> : vector<8x32xf32>
    %125 = tpu.matmul %121, %124, %cst_60 {dimension_numbers = #tpu.dot_dimension_numbers<[1], [0], [0], [1], [0, 0, 1, 1], [], []>, precision = #tpu.contract_precision<fp32>} : vector<8x32xf32>, vector<32x32xf32>, vector<8x32xf32> -> vector<8x32xf32>
    %c2_61 = arith.constant 2 : index
    %c0_62 = arith.constant 0 : index
    %c0_63 = arith.constant 0 : index
    %126 = vector.load %arg6[%c2_61, %c0_62, %c0_63] : memref<4x1x32xf32, #tpu.memory_space<vmem>>, vector<1x1x32xf32>
    %127 = vector.shape_cast %126 : vector<1x1x32xf32> to vector<1x32xf32>
    %128 = vector.broadcast %127 : vector<1x32xf32> to vector<8x32xf32>
    %129 = arith.addf %125, %128 : vector<8x32xf32>
    %130 = arith.addf %129, %122 : vector<8x32xf32>
    %131 = arith.negf %130 : vector<8x32xf32>
    %132 = math.exp %131 : vector<8x32xf32>
    %cst_64 = arith.constant 1.000000e+00 : f32
    %133 = vector.broadcast %cst_64 : f32 to vector<8x32xf32>
    %134 = arith.addf %133, %132 : vector<8x32xf32>
    %135 = arith.divf %133, %134 : vector<8x32xf32>
    %136 = arith.mulf %130, %135 : vector<8x32xf32>
    %cst_65 = arith.constant dense<0.000000e+00> : vector<8xf32>
    %137 = vector.multi_reduction <add>, %136, %cst_65 [1] : vector<8x32xf32> to vector<8xf32>
    %138 = vector.shape_cast %137 : vector<8xf32> to vector<8x1xf32>
    %cst_66 = arith.constant 3.125000e-02 : f32
    %139 = vector.broadcast %cst_66 : f32 to vector<8x1xf32>
    %140 = arith.mulf %138, %139 : vector<8x1xf32>
    %141 = vector.broadcast %140 : vector<8x1xf32> to vector<8x32xf32>
    %142 = arith.subf %136, %141 : vector<8x32xf32>
    %143 = arith.mulf %142, %142 : vector<8x32xf32>
    %cst_67 = arith.constant dense<0.000000e+00> : vector<8xf32>
    %144 = vector.multi_reduction <add>, %143, %cst_67 [1] : vector<8x32xf32> to vector<8xf32>
    %145 = vector.shape_cast %144 : vector<8xf32> to vector<8x1xf32>
    %cst_68 = arith.constant 3.125000e-02 : f32
    %146 = vector.broadcast %cst_68 : f32 to vector<8x1xf32>
    %147 = arith.mulf %145, %146 : vector<8x1xf32>
    %cst_69 = arith.constant 1.000000e-01 : f32
    %148 = vector.broadcast %cst_69 : f32 to vector<8x1xf32>
    %149 = arith.addf %147, %148 : vector<8x1xf32>
    %150 = math.rsqrt %149 : vector<8x1xf32>
    %151 = vector.broadcast %150 : vector<8x1xf32> to vector<8x32xf32>
    %152 = arith.mulf %142, %151 : vector<8x32xf32>
    %c3 = arith.constant 3 : index
    %c0_70 = arith.constant 0 : index
    %c0_71 = arith.constant 0 : index
    %153 = vector.load %arg7[%c3, %c0_70, %c0_71] : memref<5x1x32xf32, #tpu.memory_space<vmem>>, vector<1x1x32xf32>
    %154 = vector.shape_cast %153 : vector<1x1x32xf32> to vector<1x32xf32>
    %155 = vector.broadcast %154 : vector<1x32xf32> to vector<8x32xf32>
    %156 = arith.mulf %152, %155 : vector<8x32xf32>
    %c3_72 = arith.constant 3 : index
    %c0_73 = arith.constant 0 : index
    %c0_74 = arith.constant 0 : index
    %157 = vector.load %arg8[%c3_72, %c0_73, %c0_74] : memref<5x1x32xf32, #tpu.memory_space<vmem>>, vector<1x1x32xf32>
    %158 = vector.shape_cast %157 : vector<1x1x32xf32> to vector<1x32xf32>
    %159 = vector.broadcast %158 : vector<1x32xf32> to vector<8x32xf32>
    %160 = arith.addf %156, %159 : vector<8x32xf32>
    %161 = arith.addf %122, %160 : vector<8x32xf32>
    %c3_75 = arith.constant 3 : index
    %c0_76 = arith.constant 0 : index
    %c0_77 = arith.constant 0 : index
    %162 = vector.load %arg5[%c3_75, %c0_76, %c0_77] : memref<4x32x32xf32, #tpu.memory_space<vmem>>, vector<1x32x32xf32>
    %163 = vector.shape_cast %162 : vector<1x32x32xf32> to vector<32x32xf32>
    %cst_78 = arith.constant dense<0.000000e+00> : vector<8x32xf32>
    %164 = tpu.matmul %160, %163, %cst_78 {dimension_numbers = #tpu.dot_dimension_numbers<[1], [0], [0], [1], [0, 0, 1, 1], [], []>, precision = #tpu.contract_precision<fp32>} : vector<8x32xf32>, vector<32x32xf32>, vector<8x32xf32> -> vector<8x32xf32>
    %c3_79 = arith.constant 3 : index
    %c0_80 = arith.constant 0 : index
    %c0_81 = arith.constant 0 : index
    %165 = vector.load %arg6[%c3_79, %c0_80, %c0_81] : memref<4x1x32xf32, #tpu.memory_space<vmem>>, vector<1x1x32xf32>
    %166 = vector.shape_cast %165 : vector<1x1x32xf32> to vector<1x32xf32>
    %167 = vector.broadcast %166 : vector<1x32xf32> to vector<8x32xf32>
    %168 = arith.addf %164, %167 : vector<8x32xf32>
    %169 = arith.addf %168, %161 : vector<8x32xf32>
    %170 = arith.negf %169 : vector<8x32xf32>
    %171 = math.exp %170 : vector<8x32xf32>
    %cst_82 = arith.constant 1.000000e+00 : f32
    %172 = vector.broadcast %cst_82 : f32 to vector<8x32xf32>
    %173 = arith.addf %172, %171 : vector<8x32xf32>
    %174 = arith.divf %172, %173 : vector<8x32xf32>
    %175 = arith.mulf %169, %174 : vector<8x32xf32>
    %cst_83 = arith.constant dense<0.000000e+00> : vector<8xf32>
    %176 = vector.multi_reduction <add>, %175, %cst_83 [1] : vector<8x32xf32> to vector<8xf32>
    %177 = vector.shape_cast %176 : vector<8xf32> to vector<8x1xf32>
    %cst_84 = arith.constant 3.125000e-02 : f32
    %178 = vector.broadcast %cst_84 : f32 to vector<8x1xf32>
    %179 = arith.mulf %177, %178 : vector<8x1xf32>
    %180 = vector.broadcast %179 : vector<8x1xf32> to vector<8x32xf32>
    %181 = arith.subf %175, %180 : vector<8x32xf32>
    %182 = arith.mulf %181, %181 : vector<8x32xf32>
    %cst_85 = arith.constant dense<0.000000e+00> : vector<8xf32>
    %183 = vector.multi_reduction <add>, %182, %cst_85 [1] : vector<8x32xf32> to vector<8xf32>
    %184 = vector.shape_cast %183 : vector<8xf32> to vector<8x1xf32>
    %cst_86 = arith.constant 3.125000e-02 : f32
    %185 = vector.broadcast %cst_86 : f32 to vector<8x1xf32>
    %186 = arith.mulf %184, %185 : vector<8x1xf32>
    %cst_87 = arith.constant 1.000000e-01 : f32
    %187 = vector.broadcast %cst_87 : f32 to vector<8x1xf32>
    %188 = arith.addf %186, %187 : vector<8x1xf32>
    %189 = math.rsqrt %188 : vector<8x1xf32>
    %190 = vector.broadcast %189 : vector<8x1xf32> to vector<8x32xf32>
    %191 = arith.mulf %181, %190 : vector<8x32xf32>
    %c4 = arith.constant 4 : index
    %c0_88 = arith.constant 0 : index
    %c0_89 = arith.constant 0 : index
    %192 = vector.load %arg7[%c4, %c0_88, %c0_89] : memref<5x1x32xf32, #tpu.memory_space<vmem>>, vector<1x1x32xf32>
    %193 = vector.shape_cast %192 : vector<1x1x32xf32> to vector<1x32xf32>
    %194 = vector.broadcast %193 : vector<1x32xf32> to vector<8x32xf32>
    %195 = arith.mulf %191, %194 : vector<8x32xf32>
    %c4_90 = arith.constant 4 : index
    %c0_91 = arith.constant 0 : index
    %c0_92 = arith.constant 0 : index
    %196 = vector.load %arg8[%c4_90, %c0_91, %c0_92] : memref<5x1x32xf32, #tpu.memory_space<vmem>>, vector<1x1x32xf32>
    %197 = vector.shape_cast %196 : vector<1x1x32xf32> to vector<1x32xf32>
    %198 = vector.broadcast %197 : vector<1x32xf32> to vector<8x32xf32>
    %199 = arith.addf %195, %198 : vector<8x32xf32>
    %c0_93 = arith.constant 0 : index
    %c0_94 = arith.constant 0 : index
    %200 = vector.load %arg9[%c0_93, %c0_94] : memref<32x16xf32, #tpu.memory_space<vmem>>, vector<32x16xf32>
    %cst_95 = arith.constant dense<0.000000e+00> : vector<8x16xf32>
    %201 = tpu.matmul %199, %200, %cst_95 {dimension_numbers = #tpu.dot_dimension_numbers<[1], [0], [0], [1], [0, 0, 1, 1], [], []>, precision = #tpu.contract_precision<fp32>} : vector<8x32xf32>, vector<32x16xf32>, vector<8x16xf32> -> vector<8x16xf32>
    %c0_96 = arith.constant 0 : index
    %c0_97 = arith.constant 0 : index
    %202 = vector.load %arg10[%c0_96, %c0_97] : memref<1x16xf32, #tpu.memory_space<vmem>>, vector<1x16xf32>
    %203 = vector.broadcast %202 : vector<1x16xf32> to vector<8x16xf32>
    %204 = arith.addf %201, %203 : vector<8x16xf32>
    %c0_98 = arith.constant 0 : index
    %c0_99 = arith.constant 0 : index
    %205 = vector.load %arg11[%c0_98, %c0_99] : memref<32x16xf32, #tpu.memory_space<vmem>>, vector<32x16xf32>
    %cst_100 = arith.constant dense<0.000000e+00> : vector<8x16xf32>
    %206 = tpu.matmul %199, %205, %cst_100 {dimension_numbers = #tpu.dot_dimension_numbers<[1], [0], [0], [1], [0, 0, 1, 1], [], []>, precision = #tpu.contract_precision<fp32>} : vector<8x32xf32>, vector<32x16xf32>, vector<8x16xf32> -> vector<8x16xf32>
    %c0_101 = arith.constant 0 : index
    %c0_102 = arith.constant 0 : index
    %207 = vector.load %arg12[%c0_101, %c0_102] : memref<1x16xf32, #tpu.memory_space<vmem>>, vector<1x16xf32>
    %208 = vector.broadcast %207 : vector<1x16xf32> to vector<8x16xf32>
    %209 = arith.addf %206, %208 : vector<8x16xf32>
    %210 = arith.mulf %1, %1 : vector<8x16xf32>
    %cst_103 = arith.constant -5.000000e-01 : f32
    %211 = vector.broadcast %cst_103 : f32 to vector<8x16xf32>
    %212 = arith.mulf %211, %210 : vector<8x16xf32>
    %cst_104 = arith.constant -2.81605864 : f32
    %213 = vector.broadcast %cst_104 : f32 to vector<8x16xf32>
    %214 = arith.addf %212, %213 : vector<8x16xf32>
    %215 = arith.subf %1, %204 : vector<8x16xf32>
    %cst_105 = arith.constant 1.83787704 : f32
    %216 = vector.broadcast %cst_105 : f32 to vector<8x16xf32>
    %217 = arith.addf %209, %216 : vector<8x16xf32>
    %218 = arith.mulf %215, %215 : vector<8x16xf32>
    %cst_106 = arith.constant 0.000000e+00 : f32
    %219 = vector.broadcast %cst_106 : f32 to vector<8x16xf32>
    %220 = arith.subf %219, %209 : vector<8x16xf32>
    %221 = math.exp %220 : vector<8x16xf32>
    %222 = arith.mulf %218, %221 : vector<8x16xf32>
    %223 = arith.addf %217, %222 : vector<8x16xf32>
    %cst_107 = arith.constant -5.000000e-01 : f32
    %224 = vector.broadcast %cst_107 : f32 to vector<8x16xf32>
    %225 = arith.mulf %224, %223 : vector<8x16xf32>
    %cst_108 = arith.constant -0.287682086 : f32
    %226 = vector.broadcast %cst_108 : f32 to vector<8x16xf32>
    %227 = arith.addf %225, %226 : vector<8x16xf32>
    %cst_109 = arith.constant -2.26999655E-5 : f32
    %228 = vector.broadcast %cst_109 : f32 to vector<8x16xf32>
    %229 = arith.mulf %228, %210 : vector<8x16xf32>
    %cst_110 = arith.constant -8.22152328 : f32
    %230 = vector.broadcast %cst_110 : f32 to vector<8x16xf32>
    %231 = arith.addf %229, %230 : vector<8x16xf32>
    %232 = arith.maximumf %214, %227 : vector<8x16xf32>
    %233 = arith.maximumf %232, %231 : vector<8x16xf32>
    %234 = arith.subf %214, %233 : vector<8x16xf32>
    %235 = math.exp %234 : vector<8x16xf32>
    %236 = arith.subf %227, %233 : vector<8x16xf32>
    %237 = math.exp %236 : vector<8x16xf32>
    %238 = arith.addf %235, %237 : vector<8x16xf32>
    %239 = arith.subf %231, %233 : vector<8x16xf32>
    %240 = math.exp %239 : vector<8x16xf32>
    %241 = arith.addf %238, %240 : vector<8x16xf32>
    %242 = math.log %241 : vector<8x16xf32>
    %243 = arith.addf %233, %242 : vector<8x16xf32>
    %c0_111 = arith.constant 0 : index
    %c0_112 = arith.constant 0 : index
    %244 = vector.load %arg13[%c0_111, %c0_112] : memref<8x16xf32, #tpu.memory_space<vmem>>, vector<8x16xf32>
    tpu.vector_store %arg13[%c0_111, %c0_112], %243 {strides = array<i32>} : memref<8x16xf32, #tpu.memory_space<vmem>>, vector<8x16xf32>,
    return
  }
  func.func @transform_0(%arg0: i32) -> (i32, i32) {
    %c0_i32 = arith.constant 0 : i32
    %c0_i32_0 = arith.constant 0 : i32
    return %arg0, %c0_i32 : i32, i32
  }
  func.func @transform_1(%arg0: i32) -> (i32, i32) {
    %c0_i32 = arith.constant 0 : i32
    %c0_i32_0 = arith.constant 0 : i32
    return %arg0, %c0_i32 : i32, i32
  }
  func.func @transform_2(%arg0: i32) -> (i32, i32) {
    %c0_i32 = arith.constant 0 : i32
    %c0_i32_0 = arith.constant 0 : i32
    %c0_i32_1 = arith.constant 0 : i32
    return %c0_i32, %c0_i32_0 : i32, i32
  }
  func.func @transform_3(%arg0: i32) -> (i32, i32) {
    %c0_i32 = arith.constant 0 : i32
    %c0_i32_0 = arith.constant 0 : i32
    %c0_i32_1 = arith.constant 0 : i32
    return %c0_i32, %c0_i32_0 : i32, i32
  }
  func.func @transform_4(%arg0: i32) -> (i32, i32, i32) {
    %c0_i32 = arith.constant 0 : i32
    %c0_i32_0 = arith.constant 0 : i32
    %c0_i32_1 = arith.constant 0 : i32
    %c0_i32_2 = arith.constant 0 : i32
    return %c0_i32, %c0_i32_0, %c0_i32_1 : i32, i32, i32
  }
  func.func @transform_5(%arg0: i32) -> (i32, i32, i32) {
    %c0_i32 = arith.constant 0 : i32
    %c0_i32_0 = arith.constant 0 : i32
    %c0_i32_1 = arith.constant 0 : i32
    %c0_i32_2 = arith.constant 0 : i32
    return %c0_i32, %c0_i32_0, %c0_i32_1 : i32, i32, i32
  }
  func.func @transform_6(%arg0: i32) -> (i32, i32, i32) {
    %c0_i32 = arith.constant 0 : i32
    %c0_i32_0 = arith.constant 0 : i32
    %c0_i32_1 = arith.constant 0 : i32
    %c0_i32_2 = arith.constant 0 : i32
    return %c0_i32, %c0_i32_0, %c0_i32_1 : i32, i32, i32
  }
  func.func @transform_7(%arg0: i32) -> (i32, i32, i32) {
    %c0_i32 = arith.constant 0 : i32
    %c0_i32_0 = arith.constant 0 : i32
    %c0_i32_1 = arith.constant 0 : i32
    %c0_i32_2 = arith.constant 0 : i32
    return %c0_i32, %c0_i32_0, %c0_i32_1 : i32, i32, i32
  }
  func.func @transform_8(%arg0: i32) -> (i32, i32) {
    %c0_i32 = arith.constant 0 : i32
    %c0_i32_0 = arith.constant 0 : i32
    %c0_i32_1 = arith.constant 0 : i32
    return %c0_i32, %c0_i32_0 : i32, i32
  }
  func.func @transform_9(%arg0: i32) -> (i32, i32) {
    %c0_i32 = arith.constant 0 : i32
    %c0_i32_0 = arith.constant 0 : i32
    %c0_i32_1 = arith.constant 0 : i32
    return %c0_i32, %c0_i32_0 : i32, i32
  }
  func.func @transform_10(%arg0: i32) -> (i32, i32) {
    %c0_i32 = arith.constant 0 : i32
    %c0_i32_0 = arith.constant 0 : i32
    %c0_i32_1 = arith.constant 0 : i32
    return %c0_i32, %c0_i32_0 : i32, i32
  }
  func.func @transform_11(%arg0: i32) -> (i32, i32) {
    %c0_i32 = arith.constant 0 : i32
    %c0_i32_0 = arith.constant 0 : i32
    %c0_i32_1 = arith.constant 0 : i32
    return %c0_i32, %c0_i32_0 : i32, i32
  }
  func.func @transform_12(%arg0: i32) -> (i32, i32) {
    %c0_i32 = arith.constant 0 : i32
    %c0_i32_0 = arith.constant 0 : i32
    return %arg0, %c0_i32 : i32, i32
  }
}

</mosaic_0001>

<bundles_post_ra>
// kernel: tpu_custom_call.1
= control target key start
LH: loop header
LB: loop body
LE: loop exit
PB: predicated region body
PF: predicated region fallthrough
CT: control target
= control target key end

     0   :  { %17 = vsyncpa [#allocation3], 0  ;;  %s2272_s0 = inlined_call_operand.vmem [shape: f32[8,64], index: 0, kind: input, shape index: {}]   ;;  %s2273_s1 = inlined_call_operand.vmem [shape: f32[8,16], index: 1, kind: input, shape index: {}]   ;;  %s2274_s2 = inlined_call_operand.vmem [shape: f32[64,32], index: 2, kind: input, shape index: {}]   ;;  %s2275_s3 = inlined_call_operand.vmem [shape: f32[1,32], index: 3, kind: input, shape index: {}]   ;;  %s2276_s4 = inlined_call_operand.hbm [shape: f32[4,32,32], index: 4, kind: input, shape index: {}]   ;;  %s2277_s5 = inlined_call_operand.vmem [shape: f32[4,1,32], index: 5, kind: input, shape index: {}]   ;;  %s2278_s6 = inlined_call_operand.vmem [shape: f32[5,1,32], index: 6, kind: input, shape index: {}]   ;;  %s2279_s7 = inlined_call_operand.vmem [shape: f32[5,1,32], index: 7, kind: input, shape index: {}]   ;;  %s2280_s8 = inlined_call_operand.vmem [shape: f32[32,16], index: 8, kind: input, shape index: {}]   ;;  %s2281_s9 = inlined_call_operand.vmem [shape: f32[1,16], index: 9, kind: input, shape index: {}]   ;;  %s2282_s10 = inlined_call_operand.vmem [shape: f32[32,16], index: 10, kind: input, shape index: {}]   ;;  %s2283_s11 = inlined_call_operand.vmem [shape: f32[1,16], index: 11, kind: input, shape index: {}]   ;;  %s2284_s12 = inlined_call_operand.hbm [shape: f32[8,16], index: 12, kind: output, shape index: {}]  }
   0x1   :  { %18 = vsyncpa [#allocation4], 0  ;;  %s31_s23 = sshll.u32 %s2276_s4, 4  ;;  %s1965_s24 = smov [#allocation2]   ;;  %s32_s23 = int_to_ptr.hbm [resolvable:$true] %s31_s23 }
   0x2   :  { %s33_s25 = sshll.u32 %s1965_s24, 4  ;;  %s1966_s26 = smov 128   ;;  %s34_s25 = int_to_ptr.vmem [resolvable:$true] %s33_s25 }
   0x3   :  { %s1967_s27 = smov 8  }
   0x4   :  { %39 = dma.hbm_to_vmem [thread:$0]  %s32_s23, 2048, %s34_s25, [#allocation3], %s1966_s26, %s1966_s26, %s1967_s27  }
   0x5   :  { %1961 = dma.done.wait [#allocation3], 2048  }
   0x6   :  { %1962 = vsyncadd [#allocation3], 4294965248  ;;  %v2040_v0 = vld [vmem:[%s2272_s0] sm:$0xff]  ;;  %vm61_vm0 = vcmask 523264   ;;  %v84_v3 = vld [vmem:[%s2274_s2 + $0x38] sm:$0xff]  ;;  %vm349_vm8 = vcmask 261120  }
   0x7   :  { %v60_v1 = vmul.f32 %v2040_v0, %v2040_v0  ;;  %v2048_v4 = vand.u32 4294901760, %v84_v3  ;;  %v83_v5 = vld [vmem:[%s2274_s2 + $0x30] sm:$0xff]  ;;  %v82_v8 = vld [vmem:[%s2274_s2 + $0x28] sm:$0xff]  ;;  %v81_v12 = vld [vmem:[%s2274_s2 + $0x20] sm:$0xff] }
   0x8   :  { %v2056_v7 = vand.u32 4294901760, %v83_v5  ;;  %v2067_v11 = vand.u32 4294901760, %v82_v8  ;;  %v2080_v16 = vand.u32 4294901760, %v81_v12  ;;  %v80_v17 = vld [vmem:[%s2274_s2 + $0x18] sm:$0xff]  ;;  %v79_v23 = vld [vmem:[%s2274_s2 + $0x10] sm:$0xff]  ;;  %v78_v29 = vld [vmem:[%s2274_s2 + $0x8] sm:$0xff] }
   0x9   :  { %v62_v2 = vsel %vm61_vm0, %v60_v1, 0.0  ;;  %v2054_v6 = vsub.f32 %v84_v3, %v2048_v4  ;;  %101 = vmatpush.msra.mxu0 %v2048_v4  ;;  %233 = vmatpush.msra.mxu3 %v2048_v4  ;;  %v108_v22 = vand.u32 4294901760, %v80_v17  ;;  %v110_v27 = vand.u32 4294901760, %v79_v23  ;;  %v77_v35 = vld [vmem:[%s2274_s2] sm:$0xff] }
   0xa   :  { %63 = vadd.xlane.f32.xlu0 %v62_v2  ;;  %v2065_v10 = vsub.f32 %v83_v5, %v2056_v7  ;;  %v2078_v15 = vsub.f32 %v82_v8, %v2067_v11  ;;  %v152_v21 = vsub.f32 %v81_v12, %v2080_v16  ;;  %v112_v33 = vand.u32 4294901760, %v78_v29 }
   0xb   :  { %v135_v9 = vand.u32 4294901760, %v2054_v6  ;;  %196 = vmatpush.msra.mxu2 %v2054_v6  ;;  %103 = vmatpush.msra.mxu0 %v2056_v7  ;;  %v158_v28 = vsub.f32 %v80_v17, %v108_v22  ;;  %v164_v32 = vsub.f32 %v79_v23, %v110_v27  ;;  %v114_v39 = vand.u32 4294901760, %v77_v35 }
   0xc   :  { %235 = vmatpush.msra.mxu3 %v2056_v7  ;;  %v141_v14 = vand.u32 4294901760, %v2065_v10  ;;  %v147_v20 = vand.u32 4294901760, %v2078_v15  ;;  %v153_v26 = vand.u32 4294901760, %v152_v21  ;;  %v170_v38 = vsub.f32 %v78_v29, %v112_v33 }
   0xd   :  { %v136_v13 = vsub.f32 %v2054_v6, %v135_v9  ;;  %199 = vmatpush.msra.mxu2 %v2065_v10  ;;  %105 = vmatpush.msra.mxu0 %v2067_v11  ;;  %v159_v34 = vand.u32 4294901760, %v158_v28  ;;  %v165_v37 = vand.u32 4294901760, %v164_v32  ;;  %v176_v43 = vsub.f32 %v77_v35, %v114_v39 }
   0xe   :  { %237 = vmatpush.msra.mxu3 %v2067_v11  ;;  %v142_v19 = vsub.f32 %v2065_v10, %v141_v14  ;;  %v148_v25 = vsub.f32 %v2078_v15, %v147_v20  ;;  %v154_v31 = vsub.f32 %v152_v21, %v153_v26  ;;  %v171_v42 = vand.u32 4294901760, %v170_v38 }
   0xf   :  { %v137_v18 = vand.u32 4294901760, %v136_v13  ;;  %202 = vmatpush.msra.mxu2 %v2078_v15  ;;  %107 = vmatpush.msra.mxu0 %v2080_v16  ;;  %v160_v40 = vsub.f32 %v158_v28, %v159_v34  ;;  %v166_v41 = vsub.f32 %v164_v32, %v165_v37  ;;  %v177_v47 = vand.u32 4294901760, %v176_v43 }
  0x10   :  { %239 = vmatpush.msra.mxu3 %v2080_v16  ;;  %v143_v24 = vand.u32 4294901760, %v142_v19  ;;  %v149_v30 = vand.u32 4294901760, %v148_v25  ;;  %v155_v36 = vand.u32 4294901760, %v154_v31  ;;  %v172_v46 = vsub.f32 %v170_v38, %v171_v42 }
  0x11   :  { %138 = vmatpush.msra.mxu1 %v137_v18  ;;  %205 = vmatpush.msra.mxu2 %v152_v21  ;;  %v161_v44 = vand.u32 4294901760, %v160_v40  ;;  %v167_v45 = vand.u32 4294901760, %v166_v41  ;;  %v178_v49 = vsub.f32 %v176_v43, %v177_v47  ;;  %v383_v41 = vld [vmem:[#allocation2 + $0x8] sm:$0xff] }
  0x12   :  { %109 = vmatpush.msra.mxu0 %v108_v22  ;;  %241 = vmatpush.msra.mxu3 %v108_v22  ;;  %v173_v48 = vand.u32 4294901760, %v172_v46 }
  0x13   :  { %144 = vmatpush.msra.mxu1 %v143_v24  ;;  %208 = vmatpush.msra.mxu2 %v158_v28  ;;  %v179_v50 = vand.u32 4294901760, %v178_v49 }
  0x14   :  { %111 = vmatpush.msra.mxu0 %v110_v27  ;;  %243 = vmatpush.msra.mxu3 %v110_v27 }
  0x15   :  { %150 = vmatpush.msra.mxu1 %v149_v30  ;;  %211 = vmatpush.msra.mxu2 %v164_v32 }
  0x16   :  { %113 = vmatpush.msra.mxu0 %v112_v33  ;;  %245 = vmatpush.msra.mxu3 %v112_v33 }
  0x17   :  { %156 = vmatpush.msra.mxu1 %v155_v36  ;;  %214 = vmatpush.msra.mxu2 %v170_v38  ;;  %v385_v36 = vld [vmem:[#allocation2 + $0x18] sm:$0xff]  ;;  %v384_v38 = vld [vmem:[#allocation2 + $0x10] sm:$0xff] }
  0x18   :  { %115 = vmatpush.msra.mxu0 %v114_v39  ;;  %247 = vmatpush.msra.mxu3 %v114_v39  ;;  %v407_v40 = vand.u32 4294901760, %v384_v38 }
  0x19   :  { %162 = vmatpush.msra.mxu1 %v161_v44  ;;  %217 = vmatpush.msra.mxu2 %v176_v43  ;;  %v409_v44 = vand.u32 4294901760, %v383_v41 }
  0x1a   :  { %266 = vmatpush.msrb.mxu0 %v135_v9  ;;  %v441_v43 = vsub.f32 %v384_v38, %v407_v40 }
  0x1b   :  { %168 = vmatpush.msra.mxu1 %v167_v45  ;;  %v382_v45 = vld [vmem:[#allocation2] sm:$0xff] }
  0x1c   :  { %270 = vmatpush.msrb.mxu0 %v141_v14  ;;  %v411_v49 = vand.u32 4294901760, %v382_v45 }
  0x1d   :  { %174 = vmatpush.msra.mxu1 %v173_v48  ;;  %v447_v48 = vsub.f32 %v383_v41, %v409_v44 }
  0x1e   :  { %274 = vmatpush.msrb.mxu0 %v147_v20 }
  0x1f   :  { %180 = vmatpush.msra.mxu1 %v179_v50 }
  0x20   :  { %278 = vmatpush.msrb.mxu0 %v153_v26 }
  0x21   :  { %309 = vmatpush.msrb.mxu1 %v2048_v4  ;;  %v1854_v4 = vld [vmem:[%s2275_s3] ss:$0 sm:$0xff] }
  0x22   :  { %282 = vmatpush.msrb.mxu0 %v159_v34 }
  0x23   :  { %311 = vmatpush.msrb.mxu1 %v2056_v7 }
  0x24   :  { %286 = vmatpush.msrb.mxu0 %v165_v37  ;;  %v405_v37 = vand.u32 4294901760, %v385_v36 }
  0x25   :  { %313 = vmatpush.msrb.mxu1 %v2067_v11 }
  0x26   :  { %290 = vmatpush.msrb.mxu0 %v171_v42  ;;  %406 = vmatpush.msrb.mxu2 %v405_v37 }
  0x27   :  { %315 = vmatpush.msrb.mxu1 %v2080_v16 }
  0x28   :  { %294 = vmatpush.msrb.mxu0 %v177_v47  ;;  %408 = vmatpush.msrb.mxu2 %v407_v40  ;;  %v442_v47 = vand.u32 4294901760, %v441_v43 }
  0x29   :  { %317 = vmatpush.msrb.mxu1 %v108_v22 }
  0x2a   :  { %410 = vmatpush.msrb.mxu2 %v409_v44 }
  0x2b   :  { %319 = vmatpush.msrb.mxu1 %v110_v27 }
  0x2c   :  { %412 = vmatpush.msrb.mxu2 %v411_v49 }
  0x2d   :  { %321 = vmatpush.msrb.mxu1 %v112_v33 }
  0x2f   :  { %323 = vmatpush.msrb.mxu1 %v114_v39  ;;  %v435_v39 = vsub.f32 %v385_v36, %v405_v37 }
  0x31   :  { %v436_v42 = vand.u32 4294901760, %v435_v39 }
  0x33   :  { %v437_v46 = vsub.f32 %v435_v39, %v436_v42 }
  0x35   :  { %v438_v50 = vand.u32 4294901760, %v437_v46 }
  0x37   :  { %439 = vmatpush.msrb.mxu3 %v438_v50 }
  0x7d   :  { %v64_v51 = vpop.xlane.xlu0 %63 }
  0x7e   :  { %v65_v52 = vmax.f32 %v64_v51, 1e-30  ;;  %v443_v51 = vsub.f32 %v441_v43, %v442_v47 }
  0x80   :  { %1871 = vrsqrt.f32 %v65_v52  ;;  %vm72_vm2 = vweird.f32 %v65_v52 }
  0x86   :  { %v1872_v53 = vpop.eup %1871 }
  0x87   :  { %v67_v54 = vmul.f32 %v1872_v53, %v65_v52  ;;  %vm73_vm1 = vweird.f32 %v1872_v53  ;;  %v448_v52 = vand.u32 4294901760, %v447_v48 }
  0x88   :  { %vm74_vm3 = vmor %vm72_vm2, %vm73_vm1 }
  0x89   :  { %v68_v55 = vmul.f32 %v1872_v53, %v67_v54  ;;  %v444_v54 = vand.u32 4294901760, %v443_v51  ;;  %v638_v51 = vld [vmem:[#allocation2 + $0x38] sm:$0xff] }
  0x8b   :  { %v69_v56 = vmul.f32 0.5, %v68_v55  ;;  %v449_v55 = vsub.f32 %v447_v48, %v448_v52  ;;  %445 = vmatpush.msrb.mxu3 %v444_v54 }
  0x8d   :  { %v70_v57 = vsub.f32 1.5, %v69_v56 }
  0x8f   :  { %v71_v58 = vmul.f32 %v1872_v53, %v70_v57  ;;  %v450_v57 = vand.u32 4294901760, %v449_v55 }
  0x91   :  { %v75_v59 = vsel %vm74_vm3, %v1872_v53, %v71_v58  ;;  %v453_v53 = vsub.f32 %v382_v45, %v411_v49  ;;  %451 = vmatpush.msrb.mxu3 %v450_v57 }
  0x92   :  { %v76_v60 = vmul.f32 %v75_v59, %v2040_v0 }
  0x93   :  { %v454_v56 = vand.u32 4294901760, %v453_v53 }
  0x94   :  { %v90_v61 = vsel %vm61_vm0, %v76_v60, 0 }
  0x95   :  { %v116_v62 = vand.u32 4294901760, %v90_v61  ;;  %v455_v58 = vsub.f32 %v453_v53, %v454_v56 }
  0x97   :  { %182 = vmatmul.f32.vlgmr.msra.gmra.mxu1 %v116_v62  ;;  %v117_v63 = vsub.f32 %v90_v61, %v116_v62  ;;  %v456_v59 = vand.u32 4294901760, %v455_v58 }
  0x98   :  { %566 = vmatpush.msra.mxu1 %v405_v37 }
  0x99   :  { %220 = vmatmul.f32.vlgmr.msra.gmra.mxu2 %v117_v63  ;;  %v118_v1 = vand.u32 4294901760, %v117_v63  ;;  %457 = vmatpush.msrb.mxu3 %v456_v59 }
  0x9a   :  { %568 = vmatpush.msra.mxu1 %v407_v40  ;;  %477 = vmatpush.msra.mxu2 %v435_v39 }
  0x9b   :  { %251 = vmatmul.f32.vlgmr.msra.gmra.mxu3 %v118_v1  ;;  %v119_v2 = vsub.f32 %v117_v63, %v118_v1 }
  0x9c   :  { %570 = vmatpush.msra.mxu1 %v409_v44  ;;  %480 = vmatpush.msra.mxu2 %v441_v43 }
  0x9d   :  { %v120_v3 = vand.u32 4294901760, %v119_v2  ;;  %506 = vmatpush.msra.mxu3 %v405_v37 }
  0x9e   :  { %572 = vmatpush.msra.mxu1 %v411_v49  ;;  %483 = vmatpush.msra.mxu2 %v447_v48 }
  0x9f   :  { %121 = vmatmul.f32.vlgmr.msra.gmra.mxu0 %v120_v3  ;;  %325 = vmatmul.f32.vlgmr.msrb.gmra.mxu1 %v116_v62 }
  0xa0   :  { %535 = vmatpush.msra.mxu0 %v436_v42  ;;  %486 = vmatpush.msra.mxu2 %v453_v53  ;;  %v637_v53 = vld [vmem:[#allocation2 + $0x30] sm:$0xff] }
  0xa1   :  { %508 = vmatpush.msra.mxu3 %v407_v40  ;;  %v661_v55 = vand.u32 4294901760, %v637_v53 }
  0xa2   :  { %539 = vmatpush.msra.mxu0 %v442_v47 }
  0xa3   :  { %510 = vmatpush.msra.mxu3 %v409_v44  ;;  %v695_v58 = vsub.f32 %v637_v53, %v661_v55 }
  0xa4   :  { %543 = vmatpush.msra.mxu0 %v448_v52  ;;  %v659_v52 = vand.u32 4294901760, %v638_v51 }
  0xa5   :  { %512 = vmatpush.msra.mxu3 %v411_v49 }
  0xa6   :  { %547 = vmatpush.msra.mxu0 %v454_v56  ;;  %v689_v54 = vsub.f32 %v638_v51, %v659_v52  ;;  %760 = vmatpush.msrb.mxu1 %v659_v52  ;;  %v636_v56 = vld [vmem:[#allocation2 + $0x28] sm:$0xff] }
  0xa7   :  { %296 = vmatmul.f32.vlgmr.msrb.gmra.mxu0 %v116_v62  ;;  %v663_v59 = vand.u32 4294901760, %v636_v56 }
  0xa8   :  { %v690_v57 = vand.u32 4294901760, %v689_v54  ;;  %731 = vmatpush.msrb.mxu0 %v689_v54  ;;  %762 = vmatpush.msrb.mxu1 %v661_v55 }
  0xaa   :  { %734 = vmatpush.msrb.mxu0 %v695_v58  ;;  %764 = vmatpush.msrb.mxu1 %v663_v59 }
 0x114   :  { %v183_v5 = vpop.f32.mrf.mxu1 }
 0x11c   :  { %v122_v6 = vpop.f32.mrf.mxu0  ;;  %v221_v8 = vpop.f32.mrf.mxu2 }
 0x11d   :  { %v123_v0 = vadd.f32 %v1854_v4, %v122_v6  ;;  %v326_v14 = vpop.f32.mrf.mxu1  ;;  %v1855_v6 = vld [vmem:[%s2278_s6] ss:$0 sm:$0xff] }
 0x11e   :  { %v252_v10 = vpop.f32.mrf.mxu3 }
 0x11f   :  { %v184_v7 = vadd.f32 %v183_v5, %v123_v0 }
 0x121   :  { %v222_v9 = vadd.f32 %v221_v8, %v184_v7  ;;  %v1856_v8 = vld [vmem:[%s2279_s7] ss:$0 sm:$0xff] }
 0x123   :  { %v253_v11 = vadd.f32 %v252_v10, %v222_v9 }
 0x124   :  { %v297_v12 = vpop.f32.mrf.mxu0 }
 0x125   :  { %v298_v13 = vadd.f32 %v297_v12, %v253_v11 }
 0x127   :  { %v327_v15 = vadd.f32 %v326_v14, %v298_v13 }
 0x129   :  { %v1834_v16 = vmul.f32 -1.442695, %v327_v15 }
 0x12b   :  { %1873 = vpow2.f32 %v1834_v16 }
 0x131   :  { %v1874_v17 = vpop.eup %1873 }
 0x132   :  { %v332_v18 = vadd.f32 1.0, %v1874_v17  ;;  %v1857_v17 = vld [vmem:[%s2277_s5] ss:$0 sm:$0xff] }
 0x134   :  { %1875 = vrcp.f32 %v332_v18  ;;  %v344_v22 = vand.u32 2147483648, %v332_v18  ;;  %v342_v24 = vand.u32 2147483647, %v332_v18  ;;  %vm338_vm5 = vweird.f32 %v332_v18 }
 0x136   :  { %v345_v26 = vor.u32 1.1754944e-38, %v344_v22  ;;  %vm343_vm7 = vcmp.eq.f32.partialorder %v342_v24, 8.507059e+37 }
 0x13a   :  { %v1876_v19 = vpop.eup %1875 }
 0x13b   :  { %v334_v20 = vmul.f32 %v1876_v19, %v332_v18  ;;  %vm339_vm4 = vweird.f32 %v1876_v19 }
 0x13c   :  { %vm340_vm6 = vmor %vm338_vm5, %vm339_vm4 }
 0x13d   :  { %v335_v21 = vsub.f32 1.0, %v334_v20 }
 0x13f   :  { %v336_v23 = vmul.f32 %v1876_v19, %v335_v21 }
 0x141   :  { %v337_v25 = vadd.f32 %v1876_v19, %v336_v23 }
 0x143   :  { %v341_v27 = vsel %vm340_vm6, %v1876_v19, %v337_v25 }
 0x144   :  { %v346_v28 = vsel %vm343_vm7, %v345_v26, %v341_v27 }
 0x145   :  { %v348_v29 = vmul.f32 %v346_v28, %v327_v15 }
 0x147   :  { %v350_v30 = vsel %vm349_vm8, %v348_v29, 0.0 }
 0x148   :  { %351 = vadd.xlane.f32.xlu0 %v350_v30 }
 0x1bb   :  { %v352_v31 = vpop.xlane.xlu0 %351 }
 0x1bc   :  { %v353_v32 = vmul.f32 0.03125, %v352_v31 }
 0x1be   :  { %v2114_v33 = vsub.f32 %v348_v29, %v353_v32 }
 0x1c0   :  { %v355_v34 = vmul.f32 %v2114_v33, %v2114_v33 }
 0x1c2   :  { %v356_v35 = vsel %vm349_vm8, %v355_v34, 0.0 }
 0x1c3   :  { %357 = vadd.xlane.f32.xlu1 %v356_v35 }
 0x236   :  { %v358_v60 = vpop.xlane.xlu1 %357 }
 0x237   :  { %v359_v61 = vmul.f32 0.03125, %v358_v60  ;;  %v635_v60 = vld [vmem:[#allocation2 + $0x20] sm:$0xff] }
 0x239   :  { %v360_v62 = vadd.f32 0.1, %v359_v61  ;;  %v691_v61 = vsub.f32 %v689_v54, %v690_v57 }
 0x23b   :  { %1877 = vrsqrt.f32 %v360_v62  ;;  %vm367_vm10 = vweird.f32 %v360_v62 }
 0x241   :  { %v1878_v63 = vpop.eup %1877 }
 0x242   :  { %v362_v1 = vmul.f32 %v1878_v63, %v360_v62  ;;  %vm368_vm9 = vweird.f32 %v1878_v63  ;;  %v696_v62 = vand.u32 4294901760, %v695_v58 }
 0x243   :  { %vm369_vm11 = vmor %vm367_vm10, %vm368_vm9 }
 0x244   :  { %v363_v2 = vmul.f32 %v1878_v63, %v362_v1  ;;  %v665_v1 = vand.u32 4294901760, %v635_v60 }
 0x246   :  { %v364_v3 = vmul.f32 0.5, %v363_v2  ;;  %v692_v2 = vand.u32 4294901760, %v691_v61  ;;  %766 = vmatpush.msrb.mxu1 %v665_v1 }
 0x248   :  { %v365_v4 = vsub.f32 1.5, %v364_v3  ;;  %v697_v3 = vsub.f32 %v695_v58, %v696_v62 }
 0x24a   :  { %v366_v5 = vmul.f32 %v1878_v63, %v365_v4 }
 0x24c   :  { %v370_v0 = vsel %vm369_vm11, %v1878_v63, %v366_v5  ;;  %v701_v63 = vsub.f32 %v636_v56, %v663_v59  ;;  %v707_v5 = vsub.f32 %v635_v60, %v665_v1 }
 0x24d   :  { %v371_v7 = vmul.f32 %v370_v0, %v2114_v33 }
 0x24e   :  { %v702_v4 = vand.u32 4294901760, %v701_v63  ;;  %737 = vmatpush.msrb.mxu0 %v701_v63 }
 0x24f   :  { %v376_v9 = vmul.f32 %v1855_v6, %v371_v7  ;;  %v698_v6 = vand.u32 4294901760, %v697_v3  ;;  %v708_v7 = vand.u32 4294901760, %v707_v5 }
 0x250   :  { %v703_v0 = vsub.f32 %v701_v63, %v702_v4  ;;  %740 = vmatpush.msrb.mxu0 %v707_v5 }
 0x251   :  { %v2126_v10 = vadd.f32 %v1856_v8, %v376_v9  ;;  %v709_v9 = vsub.f32 %v707_v5, %v708_v7 }
 0x252   :  { %v704_v8 = vand.u32 4294901760, %v703_v0 }
 0x253   :  { %v391_v11 = vsel %vm349_vm8, %v2126_v10, 0 }
 0x254   :  { %v413_v12 = vand.u32 4294901760, %v391_v11 }
 0x256   :  { %459 = vmatmul.f32.vlgmr.msrb.gmra.mxu3 %v413_v12  ;;  %549 = vmatmul.f32.vlgmr.msra.gmra.mxu0 %v413_v12  ;;  %v414_v13 = vsub.f32 %v391_v11, %v413_v12  ;;  %v710_v11 = vand.u32 4294901760, %v709_v9 }
 0x257   :  { %574 = vmatmul.f32.vlgmr.msra.gmra.mxu1 %v413_v12  ;;  %693 = vmatpush.msrb.mxu3 %v692_v2 }
 0x258   :  { %v415_v14 = vand.u32 4294901760, %v414_v13 }
 0x259   :  { %699 = vmatpush.msrb.mxu3 %v698_v6  ;;  %v891_v6 = vld [vmem:[#allocation2 + $0x50] sm:$0xff] }
 0x25a   :  { %v416_v15 = vsub.f32 %v414_v13, %v415_v14 }
 0x25b   :  { %705 = vmatpush.msrb.mxu3 %v704_v8  ;;  %v890_v8 = vld [vmem:[#allocation2 + $0x48] sm:$0xff] }
 0x25c   :  { %v417_v16 = vand.u32 4294901760, %v416_v15 }
 0x25d   :  { %711 = vmatpush.msrb.mxu3 %v710_v11 }
 0x25e   :  { %418 = vmatmul.f32.vlgmr.msrb.gmra.mxu2 %v417_v16  ;;  %516 = vmatmul.f32.vlgmr.msra.gmra.mxu3 %v415_v14 }
 0x25f   :  { %660 = vmatpush.msrb.mxu2 %v659_v52  ;;  %820 = vmatpush.msra.mxu3 %v659_v52 }
 0x261   :  { %662 = vmatpush.msrb.mxu2 %v661_v55  ;;  %822 = vmatpush.msra.mxu3 %v661_v55 }
 0x263   :  { %664 = vmatpush.msrb.mxu2 %v663_v59  ;;  %824 = vmatpush.msra.mxu3 %v663_v59 }
 0x265   :  { %666 = vmatpush.msrb.mxu2 %v665_v1  ;;  %826 = vmatpush.msra.mxu3 %v665_v1 }
 0x266   :  { %489 = vmatmul.f32.vlgmr.msra.gmra.mxu2 %v414_v13 }
 0x267   :  { %789 = vmatpush.msra.mxu2 %v690_v57 }
 0x269   :  { %793 = vmatpush.msra.mxu2 %v696_v62 }
 0x26b   :  { %797 = vmatpush.msra.mxu2 %v702_v4  ;;  %v892_v4 = vld [vmem:[#allocation2 + $0x58] sm:$0xff] }
 0x26c   :  { %v913_v5 = vand.u32 4294901760, %v892_v4 }
 0x26d   :  { %801 = vmatpush.msra.mxu2 %v708_v7  ;;  %v915_v7 = vand.u32 4294901760, %v891_v6 }
 0x26e   :  { %v943_v0 = vsub.f32 %v892_v4, %v913_v5  ;;  %914 = vmatpush.msra.mxu0 %v913_v5 }
 0x26f   :  { %v949_v11 = vsub.f32 %v891_v6, %v915_v7 }
 0x270   :  { %v944_v9 = vand.u32 4294901760, %v943_v0  ;;  %916 = vmatpush.msra.mxu0 %v915_v7 }
 0x2d3   :  { %v550_v26 = vpop.f32.mrf.mxu0 }
 0x2d4   :  { %v575_v28 = vpop.f32.mrf.mxu1 }
 0x2d9   :  { %v460_v18 = vpop.f32.mrf.mxu3 }
 0x2e1   :  { %v419_v19 = vpop.f32.mrf.mxu2  ;;  %v517_v24 = vpop.f32.mrf.mxu3 }
 0x2e2   :  { %v420_v20 = vadd.f32 %v1857_v17, %v419_v19 }
 0x2e4   :  { %v461_v21 = vadd.f32 %v460_v18, %v420_v20 }
 0x2e9   :  { %v490_v22 = vpop.f32.mrf.mxu2 }
 0x2ea   :  { %v491_v23 = vadd.f32 %v490_v22, %v461_v21  ;;  %v1858_v21 = vld [vmem:[%s2278_s6 + $0x1] ss:$0 sm:$0xff] }
 0x2ec   :  { %v518_v25 = vadd.f32 %v517_v24, %v491_v23  ;;  %v1859_v24 = vld [vmem:[%s2279_s7 + $0x1] ss:$0 sm:$0xff] }
 0x2ee   :  { %v551_v27 = vadd.f32 %v550_v26, %v518_v25 }
 0x2f0   :  { %v576_v29 = vadd.f32 %v575_v28, %v551_v27 }
 0x2f2   :  { %v578_v30 = vadd.f32 %v576_v29, %v2126_v10 }
 0x2f4   :  { %v1835_v31 = vmul.f32 -1.442695, %v578_v30 }
 0x2f6   :  { %1879 = vpow2.f32 %v1835_v31 }
 0x2fc   :  { %v1880_v32 = vpop.eup %1879 }
 0x2fd   :  { %v582_v33 = vadd.f32 1.0, %v1880_v32 }
 0x2ff   :  { %1881 = vrcp.f32 %v582_v33  ;;  %v594_v37 = vand.u32 2147483648, %v582_v33  ;;  %v592_v39 = vand.u32 2147483647, %v582_v33  ;;  %vm588_vm13 = vweird.f32 %v582_v33 }
 0x301   :  { %v595_v41 = vor.u32 1.1754944e-38, %v594_v37  ;;  %vm593_vm15 = vcmp.eq.f32.partialorder %v592_v39, 8.507059e+37 }
 0x305   :  { %v1882_v34 = vpop.eup %1881 }
 0x306   :  { %v584_v35 = vmul.f32 %v1882_v34, %v582_v33  ;;  %vm589_vm12 = vweird.f32 %v1882_v34  ;;  %v1860_v33 = vld [vmem:[%s2277_s5 + $0x1] ss:$0 sm:$0xff] }
 0x307   :  { %vm590_vm14 = vmor %vm588_vm13, %vm589_vm12 }
 0x308   :  { %v585_v36 = vsub.f32 1.0, %v584_v35 }
 0x30a   :  { %v586_v38 = vmul.f32 %v1882_v34, %v585_v36 }
 0x30c   :  { %v587_v40 = vadd.f32 %v1882_v34, %v586_v38 }
 0x30e   :  { %v591_v42 = vsel %vm590_vm14, %v1882_v34, %v587_v40 }
 0x30f   :  { %v596_v43 = vsel %vm593_vm15, %v595_v41, %v591_v42 }
 0x310   :  { %v598_v44 = vmul.f32 %v596_v43, %v578_v30 }
 0x312   :  { %v599_v45 = vsel %vm349_vm8, %v598_v44, 0.0 }
 0x313   :  { %600 = vadd.xlane.f32.xlu1 %v599_v45 }
 0x386   :  { %v601_v46 = vpop.xlane.xlu1 %600 }
 0x387   :  { %v602_v47 = vmul.f32 0.03125, %v601_v46 }
 0x389   :  { %v2135_v48 = vsub.f32 %v598_v44, %v602_v47 }
 0x38b   :  { %v604_v49 = vmul.f32 %v2135_v48, %v2135_v48 }
 0x38d   :  { %v605_v50 = vsel %vm349_vm8, %v604_v49, 0.0 }
 0x38e   :  { %606 = vadd.xlane.f32.xlu2 %v605_v50 }
 0x401   :  { %v607_v12 = vpop.xlane.xlu2 %606 }
 0x402   :  { %v608_v13 = vmul.f32 0.03125, %v607_v12  ;;  %v917_v12 = vand.u32 4294901760, %v890_v8 }
 0x404   :  { %v609_v14 = vadd.f32 0.1, %v608_v13  ;;  %v889_v13 = vld [vmem:[#allocation2 + $0x40] sm:$0xff]  ;;  %918 = vmatpush.msra.mxu0 %v917_v12 }
 0x406   :  { %1883 = vrsqrt.f32 %v609_v14  ;;  %vm616_vm1 = vweird.f32 %v609_v14 }
 0x40c   :  { %v1884_v15 = vpop.eup %1883 }
 0x40d   :  { %v611_v16 = vmul.f32 %v1884_v15, %v609_v14  ;;  %vm617_vm0 = vweird.f32 %v1884_v15  ;;  %v945_v14 = vsub.f32 %v943_v0, %v944_v9 }
 0x40e   :  { %vm618_vm2 = vmor %vm616_vm1, %vm617_vm0 }
 0x40f   :  { %v612_v17 = vmul.f32 %v1884_v15, %v611_v16  ;;  %v955_v16 = vsub.f32 %v890_v8, %v917_v12 }
 0x411   :  { %v613_v18 = vmul.f32 0.5, %v612_v17  ;;  %v919_v17 = vand.u32 4294901760, %v889_v13 }
 0x413   :  { %v614_v19 = vsub.f32 1.5, %v613_v18  ;;  %v946_v18 = vand.u32 4294901760, %v945_v14  ;;  %920 = vmatpush.msra.mxu0 %v919_v17 }
 0x415   :  { %v615_v20 = vmul.f32 %v1884_v15, %v614_v19  ;;  %947 = vmatpush.msra.mxu1 %v946_v18 }
 0x417   :  { %v619_v22 = vsel %vm618_vm2, %v1884_v15, %v615_v20  ;;  %v950_v15 = vand.u32 4294901760, %v949_v11  ;;  %v956_v20 = vand.u32 4294901760, %v955_v16 }
 0x418   :  { %v620_v23 = vmul.f32 %v619_v22, %v2135_v48 }
 0x419   :  { %v951_v19 = vsub.f32 %v949_v11, %v950_v15 }
 0x41a   :  { %v626_v25 = vmul.f32 %v1858_v21, %v620_v23  ;;  %v961_v21 = vsub.f32 %v889_v13, %v919_v17  ;;  %v957_v23 = vsub.f32 %v955_v16, %v956_v20 }
 0x41b   :  { %v952_v22 = vand.u32 4294901760, %v951_v19 }
 0x41c   :  { %v632_v26 = vadd.f32 %v1859_v24, %v626_v25  ;;  %v962_v24 = vand.u32 4294901760, %v961_v21  ;;  %v958_v25 = vand.u32 4294901760, %v957_v23 }
 0x41d   :  { %953 = vmatpush.msra.mxu1 %v952_v22  ;;  %v1145_v22 = vld [vmem:[#allocation2 + $0x70] sm:$0xff] }
 0x41e   :  { %v645_v27 = vsel %vm349_vm8, %v632_v26, 0  ;;  %v2152_v46 = vadd.f32 %v632_v26, %v2126_v10  ;;  %v963_v26 = vsub.f32 %v961_v21, %v962_v24 }
 0x41f   :  { %v667_v28 = vand.u32 4294901760, %v645_v27  ;;  %959 = vmatpush.msra.mxu1 %v958_v25  ;;  %v1144_v25 = vld [vmem:[#allocation2 + $0x68] sm:$0xff] }
 0x421   :  { %713 = vmatmul.f32.vlgmr.msrb.gmra.mxu3 %v667_v28  ;;  %v668_v29 = vsub.f32 %v645_v27, %v667_v28  ;;  %v964_v27 = vand.u32 4294901760, %v963_v26 }
 0x422   :  { %1014 = vmatpush.msrb.mxu3 %v913_v5 }
 0x423   :  { %743 = vmatmul.f32.vlgmr.msrb.gmra.mxu0 %v668_v29  ;;  %v669_v30 = vand.u32 4294901760, %v668_v29  ;;  %965 = vmatpush.msra.mxu1 %v964_v27 }
 0x424   :  { %1016 = vmatpush.msrb.mxu3 %v915_v7  ;;  %1043 = vmatpush.msrb.mxu0 %v944_v9 }
 0x425   :  { %770 = vmatmul.f32.vlgmr.msrb.gmra.mxu1 %v669_v30  ;;  %v670_v31 = vsub.f32 %v668_v29, %v669_v30 }
 0x426   :  { %1018 = vmatpush.msrb.mxu3 %v917_v12  ;;  %1047 = vmatpush.msrb.mxu0 %v950_v15 }
 0x427   :  { %v671_v32 = vand.u32 4294901760, %v670_v31  ;;  %1074 = vmatpush.msrb.mxu1 %v913_v5 }
 0x428   :  { %1020 = vmatpush.msrb.mxu3 %v919_v17  ;;  %1051 = vmatpush.msrb.mxu0 %v956_v20  ;;  %v1146_v20 = vld [vmem:[#allocation2 + $0x78] sm:$0xff] }
 0x429   :  { %672 = vmatmul.f32.vlgmr.msrb.gmra.mxu2 %v671_v32  ;;  %828 = vmatmul.f32.vlgmr.msra.gmra.mxu3 %v667_v28 }
 0x42a   :  { %985 = vmatpush.msrb.mxu2 %v943_v0  ;;  %1055 = vmatpush.msrb.mxu0 %v962_v24  ;;  %v1169_v24 = vand.u32 4294901760, %v1145_v22 }
 0x42b   :  { %1076 = vmatpush.msrb.mxu1 %v915_v7 }
 0x42c   :  { %988 = vmatpush.msrb.mxu2 %v949_v11  ;;  %v1203_v27 = vsub.f32 %v1145_v22, %v1169_v24 }
 0x42d   :  { %1078 = vmatpush.msrb.mxu1 %v917_v12 }
 0x42e   :  { %991 = vmatpush.msrb.mxu2 %v955_v16 }
 0x42f   :  { %1080 = vmatpush.msrb.mxu1 %v919_v17 }
 0x430   :  { %994 = vmatpush.msrb.mxu2 %v961_v21  ;;  %v1167_v21 = vand.u32 4294901760, %v1146_v20 }
 0x431   :  { %803 = vmatmul.f32.vlgmr.msra.gmra.mxu2 %v667_v28 }
 0x432   :  { %v1197_v23 = vsub.f32 %v1146_v20, %v1167_v21  ;;  %1168 = vmatpush.msra.mxu2 %v1167_v21 }
 0x434   :  { %v1198_v26 = vand.u32 4294901760, %v1197_v23  ;;  %1170 = vmatpush.msra.mxu2 %v1169_v24 }
 0x4a0   :  { %v744_v38 = vpop.f32.mrf.mxu0 }
 0x4a2   :  { %v771_v40 = vpop.f32.mrf.mxu1 }
 0x4a4   :  { %v714_v34 = vpop.f32.mrf.mxu3 }
 0x4ac   :  { %v673_v35 = vpop.f32.mrf.mxu2  ;;  %v829_v44 = vpop.f32.mrf.mxu3 }
 0x4ad   :  { %v674_v36 = vadd.f32 %v1860_v33, %v673_v35 }
 0x4af   :  { %v715_v37 = vadd.f32 %v714_v34, %v674_v36 }
 0x4b1   :  { %v745_v39 = vadd.f32 %v744_v38, %v715_v37  ;;  %v1861_v37 = vld [vmem:[%s2278_s6 + $0x2] ss:$0 sm:$0xff] }
 0x4b3   :  { %v772_v41 = vadd.f32 %v771_v40, %v745_v39  ;;  %v1862_v40 = vld [vmem:[%s2279_s7 + $0x2] ss:$0 sm:$0xff] }
 0x4b4   :  { %v804_v42 = vpop.f32.mrf.mxu2 }
 0x4b5   :  { %v805_v43 = vadd.f32 %v804_v42, %v772_v41 }
 0x4b7   :  { %v830_v45 = vadd.f32 %v829_v44, %v805_v43 }
 0x4b9   :  { %v832_v47 = vadd.f32 %v830_v45, %v2152_v46 }
 0x4bb   :  { %v1839_v48 = vmul.f32 -1.442695, %v832_v47 }
 0x4bd   :  { %1885 = vpow2.f32 %v1839_v48 }
 0x4c3   :  { %v1886_v49 = vpop.eup %1885 }
 0x4c4   :  { %v836_v50 = vadd.f32 1.0, %v1886_v49 }
 0x4c6   :  { %1887 = vrcp.f32 %v836_v50  ;;  %v848_v54 = vand.u32 2147483648, %v836_v50  ;;  %v846_v56 = vand.u32 2147483647, %v836_v50  ;;  %vm842_vm4 = vweird.f32 %v836_v50 }
 0x4c8   :  { %v849_v58 = vor.u32 1.1754944e-38, %v848_v54  ;;  %vm847_vm6 = vcmp.eq.f32.partialorder %v846_v56, 8.507059e+37 }
 0x4cc   :  { %v1888_v51 = vpop.eup %1887 }
 0x4cd   :  { %v838_v52 = vmul.f32 %v1888_v51, %v836_v50  ;;  %vm843_vm3 = vweird.f32 %v1888_v51  ;;  %v1863_v50 = vld [vmem:[%s2277_s5 + $0x2] ss:$0 sm:$0xff] }
 0x4ce   :  { %vm844_vm5 = vmor %vm842_vm4, %vm843_vm3 }
 0x4cf   :  { %v839_v53 = vsub.f32 1.0, %v838_v52 }
 0x4d1   :  { %v840_v55 = vmul.f32 %v1888_v51, %v839_v53 }
 0x4d3   :  { %v841_v57 = vadd.f32 %v1888_v51, %v840_v55 }
 0x4d5   :  { %v845_v10 = vsel %vm844_vm5, %v1888_v51, %v841_v57 }
 0x4d6   :  { %v850_v59 = vsel %vm847_vm6, %v849_v58, %v845_v10 }
 0x4d7   :  { %v852_v60 = vmul.f32 %v850_v59, %v832_v47 }
 0x4d9   :  { %v853_v61 = vsel %vm349_vm8, %v852_v60, 0.0 }
 0x4da   :  { %854 = vadd.xlane.f32.xlu2 %v853_v61 }
 0x54d   :  { %v855_v62 = vpop.xlane.xlu2 %854 }
 0x54e   :  { %v856_v63 = vmul.f32 0.03125, %v855_v62 }
 0x550   :  { %v2156_v1 = vsub.f32 %v852_v60, %v856_v63 }
 0x552   :  { %v858_v2 = vmul.f32 %v2156_v1, %v2156_v1 }
 0x554   :  { %v859_v3 = vsel %vm349_vm8, %v858_v2, 0.0 }
 0x555   :  { %860 = vadd.xlane.f32.xlu0 %v859_v3 }
 0x5c8   :  { %v861_v28 = vpop.xlane.xlu0 %860 }
 0x5c9   :  { %v862_v29 = vmul.f32 0.03125, %v861_v28  ;;  %v1171_v28 = vand.u32 4294901760, %v1144_v25 }
 0x5cb   :  { %v863_v30 = vadd.f32 0.1, %v862_v29  ;;  %v1143_v29 = vld [vmem:[#allocation2 + $0x60] sm:$0xff]  ;;  %1172 = vmatpush.msra.mxu2 %v1171_v28 }
 0x5cd   :  { %1889 = vrsqrt.f32 %v863_v30  ;;  %vm870_vm9 = vweird.f32 %v863_v30 }
 0x5d3   :  { %v1890_v31 = vpop.eup %1889 }
 0x5d4   :  { %v865_v32 = vmul.f32 %v1890_v31, %v863_v30  ;;  %vm871_vm7 = vweird.f32 %v1890_v31  ;;  %v1199_v30 = vsub.f32 %v1197_v23, %v1198_v26 }
 0x5d5   :  { %vm872_vm10 = vmor %vm870_vm9, %vm871_vm7 }
 0x5d6   :  { %v866_v33 = vmul.f32 %v1890_v31, %v865_v32  ;;  %v1209_v32 = vsub.f32 %v1144_v25, %v1171_v28 }
 0x5d8   :  { %v867_v34 = vmul.f32 0.5, %v866_v33  ;;  %v1173_v33 = vand.u32 4294901760, %v1143_v29 }
 0x5da   :  { %v868_v35 = vsub.f32 1.5, %v867_v34  ;;  %v1200_v34 = vand.u32 4294901760, %v1199_v30  ;;  %1174 = vmatpush.msra.mxu2 %v1173_v33 }
 0x5dc   :  { %v869_v36 = vmul.f32 %v1890_v31, %v868_v35  ;;  %1201 = vmatpush.msra.mxu3 %v1200_v34 }
 0x5de   :  { %v873_v38 = vsel %vm872_vm10, %v1890_v31, %v869_v36  ;;  %v1204_v31 = vand.u32 4294901760, %v1203_v27  ;;  %v1210_v36 = vand.u32 4294901760, %v1209_v32 }
 0x5df   :  { %v874_v39 = vmul.f32 %v873_v38, %v2156_v1 }
 0x5e0   :  { %v1205_v35 = vsub.f32 %v1203_v27, %v1204_v31 }
 0x5e1   :  { %v880_v41 = vmul.f32 %v1861_v37, %v874_v39  ;;  %v1215_v37 = vsub.f32 %v1143_v29, %v1173_v33  ;;  %v1211_v39 = vsub.f32 %v1209_v32, %v1210_v36 }
 0x5e2   :  { %v1206_v38 = vand.u32 4294901760, %v1205_v35 }
 0x5e3   :  { %v886_v42 = vadd.f32 %v1862_v40, %v880_v41  ;;  %v1216_v40 = vand.u32 4294901760, %v1215_v37  ;;  %v1212_v41 = vand.u32 4294901760, %v1211_v39 }
 0x5e4   :  { %1207 = vmatpush.msra.mxu3 %v1206_v38  ;;  %v1397_v38 = vld [vmem:[%s2280_s8 + $0x10] sm:$0xff] }
 0x5e5   :  { %v899_v43 = vsel %vm349_vm8, %v886_v42, 0  ;;  %v2173_v62 = vadd.f32 %v886_v42, %v2152_v46  ;;  %v1217_v42 = vsub.f32 %v1215_v37, %v1216_v40 }
 0x5e6   :  { %v921_v44 = vand.u32 4294901760, %v899_v43  ;;  %1213 = vmatpush.msra.mxu3 %v1212_v41  ;;  %v1396_v41 = vld [vmem:[%s2280_s8 + $0x8] sm:$0xff] }
 0x5e8   :  { %967 = vmatmul.f32.vlgmr.msra.gmra.mxu1 %v921_v44  ;;  %v922_v45 = vsub.f32 %v899_v43, %v921_v44  ;;  %v1218_v43 = vand.u32 4294901760, %v1217_v42 }
 0x5e9   :  { %1268 = vmatpush.msra.mxu1 %v1167_v21 }
 0x5ea   :  { %997 = vmatmul.f32.vlgmr.msrb.gmra.mxu2 %v922_v45  ;;  %v923_v47 = vand.u32 4294901760, %v922_v45  ;;  %1219 = vmatpush.msra.mxu3 %v1218_v43 }
 0x5eb   :  { %1270 = vmatpush.msra.mxu1 %v1169_v24  ;;  %1297 = vmatpush.msrb.mxu2 %v1198_v26 }
 0x5ec   :  { %1024 = vmatmul.f32.vlgmr.msrb.gmra.mxu3 %v923_v47  ;;  %v924_v48 = vsub.f32 %v922_v45, %v923_v47 }
 0x5ed   :  { %1272 = vmatpush.msra.mxu1 %v1171_v28  ;;  %1301 = vmatpush.msrb.mxu2 %v1204_v31 }
 0x5ee   :  { %v925_v49 = vand.u32 4294901760, %v924_v48  ;;  %1328 = vmatpush.msrb.mxu3 %v1167_v21 }
 0x5ef   :  { %1274 = vmatpush.msra.mxu1 %v1173_v33  ;;  %1305 = vmatpush.msrb.mxu2 %v1210_v36  ;;  %v1398_v36 = vld [vmem:[%s2280_s8 + $0x18] sm:$0xff] }
 0x5f0   :  { %926 = vmatmul.f32.vlgmr.msra.gmra.mxu0 %v925_v49  ;;  %1082 = vmatmul.f32.vlgmr.msrb.gmra.mxu1 %v921_v44 }
 0x5f1   :  { %1239 = vmatpush.msra.mxu0 %v1197_v23  ;;  %1309 = vmatpush.msrb.mxu2 %v1216_v40  ;;  %v1420_v40 = vand.u32 4294901760, %v1397_v38 }
 0x5f2   :  { %1330 = vmatpush.msrb.mxu3 %v1169_v24 }
 0x5f3   :  { %1242 = vmatpush.msra.mxu0 %v1203_v27  ;;  %v1454_v43 = vsub.f32 %v1397_v38, %v1420_v40 }
 0x5f4   :  { %1332 = vmatpush.msrb.mxu3 %v1171_v28 }
 0x5f5   :  { %1245 = vmatpush.msra.mxu0 %v1209_v32 }
 0x5f6   :  { %1334 = vmatpush.msrb.mxu3 %v1173_v33 }
 0x5f7   :  { %1248 = vmatpush.msra.mxu0 %v1215_v37  ;;  %v1418_v37 = vand.u32 4294901760, %v1398_v36 }
 0x5f8   :  { %1057 = vmatmul.f32.vlgmr.msrb.gmra.mxu0 %v921_v44 }
 0x5f9   :  { %v1448_v39 = vsub.f32 %v1398_v36, %v1418_v37  ;;  %1419 = vmatpush.msrb.mxu0 %v1418_v37 }
 0x5fb   :  { %v1449_v42 = vand.u32 4294901760, %v1448_v39  ;;  %1421 = vmatpush.msrb.mxu0 %v1420_v40 }
 0x665   :  { %v968_v51 = vpop.f32.mrf.mxu1 }
 0x66d   :  { %v927_v52 = vpop.f32.mrf.mxu0  ;;  %v998_v55 = vpop.f32.mrf.mxu2 }
 0x66e   :  { %v928_v53 = vadd.f32 %v1863_v50, %v927_v52  ;;  %v1083_v60 = vpop.f32.mrf.mxu1 }
 0x66f   :  { %v1025_v57 = vpop.f32.mrf.mxu3 }
 0x670   :  { %v969_v54 = vadd.f32 %v968_v51, %v928_v53 }
 0x672   :  { %v999_v56 = vadd.f32 %v998_v55, %v969_v54  ;;  %v1864_v54 = vld [vmem:[%s2278_s6 + $0x3] ss:$0 sm:$0xff] }
 0x674   :  { %v1026_v58 = vadd.f32 %v1025_v57, %v999_v56  ;;  %v1865_v57 = vld [vmem:[%s2279_s7 + $0x3] ss:$0 sm:$0xff] }
 0x675   :  { %v1058_v10 = vpop.f32.mrf.mxu0 }
 0x676   :  { %v1059_v59 = vadd.f32 %v1058_v10, %v1026_v58 }
 0x678   :  { %v1084_v61 = vadd.f32 %v1083_v60, %v1059_v59 }
 0x67a   :  { %v1086_v63 = vadd.f32 %v1084_v61, %v2173_v62 }
 0x67c   :  { %v1843_v1 = vmul.f32 -1.442695, %v1086_v63 }
 0x67e   :  { %1891 = vpow2.f32 %v1843_v1 }
 0x684   :  { %v1892_v2 = vpop.eup %1891 }
 0x685   :  { %v1090_v3 = vadd.f32 1.0, %v1892_v2 }
 0x687   :  { %1893 = vrcp.f32 %v1090_v3  ;;  %v1102_v0 = vand.u32 2147483648, %v1090_v3  ;;  %v1100_v8 = vand.u32 2147483647, %v1090_v3  ;;  %vm1096_vm12 = vweird.f32 %v1090_v3 }
 0x689   :  { %v1103_v11 = vor.u32 1.1754944e-38, %v1102_v0  ;;  %vm1101_vm14 = vcmp.eq.f32.partialorder %v1100_v8, 8.507059e+37 }
 0x68d   :  { %v1894_v4 = vpop.eup %1893 }
 0x68e   :  { %v1092_v5 = vmul.f32 %v1894_v4, %v1090_v3  ;;  %vm1097_vm11 = vweird.f32 %v1894_v4  ;;  %v1866_v3 = vld [vmem:[%s2277_s5 + $0x3] ss:$0 sm:$0xff]  ;;  %s1824_s5 = sshll.u32 %s2284_s12, 4  ;;  %s1825_s5 = int_to_ptr.hbm [resolvable:$true] %s1824_s5 }
 0x68f   :  { %vm1098_vm13 = vmor %vm1096_vm12, %vm1097_vm11 }
 0x690   :  { %v1093_v6 = vsub.f32 1.0, %v1092_v5 }
 0x692   :  { %v1094_v7 = vmul.f32 %v1894_v4, %v1093_v6 }
 0x694   :  { %v1095_v9 = vadd.f32 %v1894_v4, %v1094_v7 }
 0x696   :  { %v1099_v46 = vsel %vm1098_vm13, %v1894_v4, %v1095_v9 }
 0x697   :  { %v1104_v12 = vsel %vm1101_vm14, %v1103_v11, %v1099_v46 }
 0x698   :  { %v1106_v13 = vmul.f32 %v1104_v12, %v1086_v63 }
 0x69a   :  { %v1107_v14 = vsel %vm349_vm8, %v1106_v13, 0.0 }
 0x69b   :  { %1108 = vadd.xlane.f32.xlu1 %v1107_v14 }
 0x70e   :  { %v1109_v15 = vpop.xlane.xlu1 %1108 }
 0x70f   :  { %v1110_v16 = vmul.f32 0.03125, %v1109_v15 }
 0x711   :  { %v2177_v17 = vsub.f32 %v1106_v13, %v1110_v16 }
 0x713   :  { %v1112_v18 = vmul.f32 %v2177_v17, %v2177_v17 }
 0x715   :  { %v1113_v19 = vsel %vm349_vm8, %v1112_v18, 0.0 }
 0x716   :  { %1114 = vadd.xlane.f32.xlu2 %v1113_v19 }
 0x789   :  { %v1115_v44 = vpop.xlane.xlu2 %1114 }
 0x78a   :  { %v1116_v45 = vmul.f32 0.03125, %v1115_v44  ;;  %v1422_v44 = vand.u32 4294901760, %v1396_v41 }
 0x78c   :  { %v1117_v47 = vadd.f32 0.1, %v1116_v45  ;;  %v1395_v45 = vld [vmem:[%s2280_s8] sm:$0xff]  ;;  %1423 = vmatpush.msrb.mxu0 %v1422_v44 }
 0x78e   :  { %1895 = vrsqrt.f32 %v1117_v47  ;;  %vm1124_vm0 = vweird.f32 %v1117_v47 }
 0x794   :  { %v1896_v48 = vpop.eup %1895 }
 0x795   :  { %v1119_v49 = vmul.f32 %v1896_v48, %v1117_v47  ;;  %vm1125_vm15 = vweird.f32 %v1896_v48  ;;  %v1450_v47 = vsub.f32 %v1448_v39, %v1449_v42 }
 0x796   :  { %vm1126_vm1 = vmor %vm1124_vm0, %vm1125_vm15 }
 0x797   :  { %v1120_v50 = vmul.f32 %v1896_v48, %v1119_v49  ;;  %v1460_v49 = vsub.f32 %v1396_v41, %v1422_v44 }
 0x799   :  { %v1121_v51 = vmul.f32 0.5, %v1120_v50  ;;  %v1424_v50 = vand.u32 4294901760, %v1395_v45 }
 0x79b   :  { %v1122_v52 = vsub.f32 1.5, %v1121_v51  ;;  %v1451_v51 = vand.u32 4294901760, %v1450_v47  ;;  %1425 = vmatpush.msrb.mxu0 %v1424_v50 }
 0x79d   :  { %v1123_v53 = vmul.f32 %v1896_v48, %v1122_v52  ;;  %1452 = vmatpush.msrb.mxu1 %v1451_v51 }
 0x79f   :  { %v1127_v55 = vsel %vm1126_vm1, %v1896_v48, %v1123_v53  ;;  %v1455_v48 = vand.u32 4294901760, %v1454_v43  ;;  %v1461_v53 = vand.u32 4294901760, %v1460_v49 }
 0x7a0   :  { %v1128_v56 = vmul.f32 %v1127_v55, %v2177_v17 }
 0x7a1   :  { %v1456_v52 = vsub.f32 %v1454_v43, %v1455_v48 }
 0x7a2   :  { %v1134_v58 = vmul.f32 %v1864_v54, %v1128_v56  ;;  %v1466_v54 = vsub.f32 %v1395_v45, %v1424_v50  ;;  %v1462_v56 = vsub.f32 %v1460_v49, %v1461_v53 }
 0x7a3   :  { %v1457_v55 = vand.u32 4294901760, %v1456_v52 }
 0x7a4   :  { %v1140_v10 = vadd.f32 %v1865_v57, %v1134_v58  ;;  %v1467_v57 = vand.u32 4294901760, %v1466_v54  ;;  %v1594_v58 = vld [vmem:[%s2282_s10 + $0x18] sm:$0xff] }
 0x7a5   :  { %1458 = vmatpush.msrb.mxu1 %v1457_v55 }
 0x7a6   :  { %v1153_v59 = vsel %vm349_vm8, %v1140_v10, 0  ;;  %v1141_v15 = vadd.f32 %v1140_v10, %v2173_v62  ;;  %v1463_v10 = vand.u32 4294901760, %v1462_v56 }
 0x7a7   :  { %v1175_v60 = vand.u32 4294901760, %v1153_v59 }
 0x7a8   :  { %1464 = vmatpush.msrb.mxu1 %v1463_v10 }
 0x7a9   :  { %1221 = vmatmul.f32.vlgmr.msra.gmra.mxu3 %v1175_v60  ;;  %v1176_v61 = vsub.f32 %v1153_v59, %v1175_v60  ;;  %v1468_v59 = vsub.f32 %v1466_v54, %v1467_v57 }
 0x7aa   :  { %1519 = vmatpush.msra.mxu3 %v1418_v37 }
 0x7ab   :  { %1251 = vmatmul.f32.vlgmr.msra.gmra.mxu0 %v1176_v61  ;;  %v1177_v63 = vand.u32 4294901760, %v1176_v61 }
 0x7ac   :  { %1521 = vmatpush.msra.mxu3 %v1420_v40  ;;  %1548 = vmatpush.msra.mxu0 %v1449_v42 }
 0x7ad   :  { %1278 = vmatmul.f32.vlgmr.msra.gmra.mxu1 %v1177_v63  ;;  %v1178_v1 = vsub.f32 %v1176_v61, %v1177_v63  ;;  %v1593_v61 = vld [vmem:[%s2282_s10 + $0x10] sm:$0xff]  ;;  %v1469_v63 = vand.u32 4294901760, %v1468_v59 }
 0x7ae   :  { %1523 = vmatpush.msra.mxu3 %v1422_v44  ;;  %1552 = vmatpush.msra.mxu0 %v1455_v48 }
 0x7af   :  { %v1179_v2 = vand.u32 4294901760, %v1178_v1  ;;  %1470 = vmatpush.msrb.mxu1 %v1469_v63 }
 0x7b0   :  { %1525 = vmatpush.msra.mxu3 %v1424_v50  ;;  %1556 = vmatpush.msra.mxu0 %v1461_v53 }
 0x7b1   :  { %1180 = vmatmul.f32.vlgmr.msra.gmra.mxu2 %v1179_v2  ;;  %1336 = vmatmul.f32.vlgmr.msrb.gmra.mxu3 %v1175_v60  ;;  %v2224_v2 = vand.u32 4294901760, %v1593_v61 }
 0x7b2   :  { %1490 = vmatpush.msra.mxu2 %v1448_v39  ;;  %1579 = vmatpush.msra.mxu1 %v1418_v37 }
 0x7b3   :  { %1560 = vmatpush.msra.mxu0 %v1467_v57 }
 0x7b4   :  { %1493 = vmatpush.msra.mxu2 %v1454_v43  ;;  %1581 = vmatpush.msra.mxu1 %v1420_v40 }
 0x7b6   :  { %1496 = vmatpush.msra.mxu2 %v1460_v49  ;;  %1583 = vmatpush.msra.mxu1 %v1422_v44  ;;  %v1869_v44 = vld [vmem:[%s2281_s9] ss:$0 sm:$0xff] }
 0x7b7   :  { %v1870_v49 = vld [vmem:[%s2283_s11] ss:$0 sm:$0xff] }
 0x7b8   :  { %1499 = vmatpush.msra.mxu2 %v1466_v54  ;;  %1585 = vmatpush.msra.mxu1 %v1424_v50 }
 0x7b9   :  { %1311 = vmatmul.f32.vlgmr.msrb.gmra.mxu2 %v1175_v60  ;;  %v2215_v60 = vand.u32 4294901760, %v1594_v58 }
 0x7bb   :  { %1612 = vmatpush.msrb.mxu2 %v2215_v60  ;;  %v2222_v1 = vsub.f32 %v1594_v58, %v2215_v60 }
 0x7bd   :  { %1614 = vmatpush.msrb.mxu2 %v2224_v2 }
 0x828   :  { %v1252_v7 = vpop.f32.mrf.mxu0 }
 0x82a   :  { %v1279_v9 = vpop.f32.mrf.mxu1 }
 0x82c   :  { %v1222_v4 = vpop.f32.mrf.mxu3 }
 0x834   :  { %v1181_v5 = vpop.f32.mrf.mxu2  ;;  %v1337_v13 = vpop.f32.mrf.mxu3 }
 0x835   :  { %v1182_v6 = vadd.f32 %v1866_v3, %v1181_v5  ;;  %v1592_v3 = vld [vmem:[%s2282_s10 + $0x8] sm:$0xff]  ;;  %v1642_v5 = vand.u32 4294901760, %v2222_v1 }
 0x837   :  { %v1223_v0 = vadd.f32 %v1222_v4, %v1182_v6  ;;  %v2231_v6 = vand.u32 4294901760, %v1592_v3 }
 0x839   :  { %v1253_v8 = vadd.f32 %v1252_v7, %v1223_v0  ;;  %v2234_v0 = vsub.f32 %v1593_v61, %v2224_v2  ;;  %1616 = vmatpush.msrb.mxu2 %v2231_v6 }
 0x83b   :  { %v1280_v11 = vadd.f32 %v1279_v9, %v1253_v8  ;;  %v1591_v8 = vld [vmem:[%s2282_s10] sm:$0xff]  ;;  %v1643_v9 = vsub.f32 %v2222_v1, %v1642_v5 }
 0x83c   :  { %v1312_v46 = vpop.f32.mrf.mxu2 }
 0x83d   :  { %v1313_v12 = vadd.f32 %v1312_v46, %v1280_v11  ;;  %v1648_v11 = vand.u32 4294901760, %v2234_v0  ;;  %v1617_v46 = vand.u32 4294901760, %v1591_v8 }
 0x83f   :  { %v1338_v14 = vadd.f32 %v1337_v13, %v1313_v12  ;;  %v1653_v12 = vsub.f32 %v1592_v3, %v2231_v6  ;;  %1618 = vmatpush.msrb.mxu2 %v1617_v46 }
 0x841   :  { %v1340_v16 = vadd.f32 %v1338_v14, %v1141_v15  ;;  %v1644_v14 = vand.u32 4294901760, %v1643_v9  ;;  %v1649_v15 = vsub.f32 %v2234_v0, %v1648_v11 }
 0x843   :  { %v1847_v17 = vmul.f32 -1.442695, %v1340_v16  ;;  %1645 = vmatpush.msrb.mxu3 %v1644_v14 }
 0x845   :  { %1897 = vpow2.f32 %v1847_v17  ;;  %v1659_v17 = vsub.f32 %v1591_v8, %v1617_v46 }
 0x84b   :  { %v1898_v18 = vpop.eup %1897 }
 0x84c   :  { %v1344_v19 = vadd.f32 1.0, %v1898_v18  ;;  %v1650_v18 = vand.u32 4294901760, %v1649_v15 }
 0x84e   :  { %1899 = vrcp.f32 %v1344_v19  ;;  %v1356_v23 = vand.u32 2147483648, %v1344_v19  ;;  %v1354_v25 = vand.u32 2147483647, %v1344_v19  ;;  %vm1350_vm3 = vweird.f32 %v1344_v19  ;;  %1651 = vmatpush.msrb.mxu3 %v1650_v18 }
 0x850   :  { %v1357_v27 = vor.u32 1.1754944e-38, %v1356_v23  ;;  %vm1355_vm5 = vcmp.eq.f32.partialorder %v1354_v25, 8.507059e+37 }
 0x854   :  { %v1900_v20 = vpop.eup %1899 }
 0x855   :  { %v1346_v21 = vmul.f32 %v1900_v20, %v1344_v19  ;;  %vm1351_vm2 = vweird.f32 %v1900_v20 }
 0x856   :  { %vm1352_vm4 = vmor %vm1350_vm3, %vm1351_vm2 }
 0x857   :  { %v1347_v22 = vsub.f32 1.0, %v1346_v21 }
 0x859   :  { %v1348_v24 = vmul.f32 %v1900_v20, %v1347_v22 }
 0x85b   :  { %v1349_v26 = vadd.f32 %v1900_v20, %v1348_v24 }
 0x85d   :  { %v1353_v28 = vsel %vm1352_vm4, %v1900_v20, %v1349_v26  ;;  %v1660_v20 = vand.u32 4294901760, %v1659_v17 }
 0x85e   :  { %v1358_v62 = vsel %vm1355_vm5, %v1357_v27, %v1353_v28 }
 0x85f   :  { %v1360_v29 = vmul.f32 %v1358_v62, %v1340_v16  ;;  %v1654_v16 = vand.u32 4294901760, %v1653_v12  ;;  %v1661_v22 = vsub.f32 %v1659_v17, %v1660_v20 }
 0x861   :  { %v1361_v30 = vsel %vm349_vm8, %v1360_v29, 0.0  ;;  %v1655_v19 = vsub.f32 %v1653_v12, %v1654_v16  ;;  %v1662_v23 = vand.u32 4294901760, %v1661_v22 }
 0x862   :  { %1362 = vadd.xlane.f32.xlu0 %v1361_v30 }
 0x863   :  { %v1656_v21 = vand.u32 4294901760, %v1655_v19 }
 0x865   :  { %1657 = vmatpush.msrb.mxu3 %v1656_v21 }
 0x867   :  { %1663 = vmatpush.msrb.mxu3 %v1662_v23 }
 0x8d5   :  { %v1363_v31 = vpop.xlane.xlu0 %1362 }
 0x8d6   :  { %v1364_v32 = vmul.f32 0.03125, %v1363_v31  ;;  %v1868_v31 = vld [vmem:[%s2279_s7 + $0x4] ss:$0 sm:$0xff] }
 0x8d8   :  { %v2195_v33 = vsub.f32 %v1360_v29, %v1364_v32  ;;  %v1867_v29 = vld [vmem:[%s2278_s6 + $0x4] ss:$0 sm:$0xff] }
 0x8da   :  { %v1366_v34 = vmul.f32 %v2195_v33, %v2195_v33 }
 0x8dc   :  { %v1367_v35 = vsel %vm349_vm8, %v1366_v34, 0.0 }
 0x8dd   :  { %1368 = vadd.xlane.f32.xlu1 %v1367_v35 }
 0x950   :  { %v1369_v4 = vpop.xlane.xlu1 %1368 }
 0x951   :  { %v1370_v7 = vmul.f32 0.03125, %v1369_v4 }
 0x953   :  { %v1371_v13 = vadd.f32 0.1, %v1370_v7 }
 0x955   :  { %1901 = vrsqrt.f32 %v1371_v13  ;;  %vm1378_vm7 = vweird.f32 %v1371_v13 }
 0x95b   :  { %v1902_v24 = vpop.eup %1901 }
 0x95c   :  { %v1373_v25 = vmul.f32 %v1902_v24, %v1371_v13  ;;  %vm1379_vm6 = vweird.f32 %v1902_v24 }
 0x95d   :  { %vm1380_vm9 = vmor %vm1378_vm7, %vm1379_vm6 }
 0x95e   :  { %v1374_v26 = vmul.f32 %v1902_v24, %v1373_v25 }
 0x960   :  { %v1375_v27 = vmul.f32 0.5, %v1374_v26 }
 0x962   :  { %v1376_v28 = vsub.f32 1.5, %v1375_v27 }
 0x964   :  { %v1377_v62 = vmul.f32 %v1902_v24, %v1376_v28 }
 0x966   :  { %v1381_v30 = vsel %vm1380_vm9, %v1902_v24, %v1377_v62 }
 0x967   :  { %v1382_v32 = vmul.f32 %v1381_v30, %v2195_v33 }
 0x969   :  { %v1388_v34 = vmul.f32 %v1867_v29, %v1382_v32 }
 0x96b   :  { %v1394_v35 = vadd.f32 %v1868_v31, %v1388_v34 }
 0x96d   :  { %v1404_v36 = vsel %vm349_vm8, %v1394_v35, 0  ;;  %vm1815_vm8 = vcmask 130048  }
 0x96e   :  { %v1426_v37 = vand.u32 4294901760, %v1404_v36 }
 0x970   :  { %1472 = vmatmul.f32.vlgmr.msrb.gmra.mxu1 %v1426_v37  ;;  %v1427_v38 = vsub.f32 %v1404_v36, %v1426_v37 }
 0x971   :  { %1712 = vmatpush.msrb.mxu1 %v2215_v60 }
 0x972   :  { %1502 = vmatmul.f32.vlgmr.msra.gmra.mxu2 %v1427_v38  ;;  %v1428_v39 = vand.u32 4294901760, %v1427_v38 }
 0x973   :  { %1714 = vmatpush.msrb.mxu1 %v2224_v2  ;;  %1741 = vmatpush.msra.mxu2 %v1642_v5 }
 0x974   :  { %1529 = vmatmul.f32.vlgmr.msra.gmra.mxu3 %v1428_v39  ;;  %v1429_v40 = vsub.f32 %v1427_v38, %v1428_v39 }
 0x975   :  { %1716 = vmatpush.msrb.mxu1 %v2231_v6  ;;  %1745 = vmatpush.msra.mxu2 %v1648_v11 }
 0x976   :  { %v1430_v33 = vand.u32 4294901760, %v1429_v40  ;;  %1772 = vmatpush.msra.mxu3 %v2215_v60 }
 0x977   :  { %1718 = vmatpush.msrb.mxu1 %v1617_v46  ;;  %1749 = vmatpush.msra.mxu2 %v1654_v16 }
 0x978   :  { %1431 = vmatmul.f32.vlgmr.msrb.gmra.mxu0 %v1430_v33  ;;  %1587 = vmatmul.f32.vlgmr.msra.gmra.mxu1 %v1426_v37 }
 0x979   :  { %1774 = vmatpush.msra.mxu3 %v2224_v2  ;;  %1683 = vmatpush.msrb.mxu0 %v2222_v1 }
 0x97a   :  { %1624 = vmatmul.f32.vlgmr.msrb.gmra.mxu2 %v1430_v33 }
 0x97b   :  { %1753 = vmatpush.msra.mxu2 %v1660_v20  ;;  %1776 = vmatpush.msra.mxu3 %v2231_v6  ;;  %v59_v6 = vld [vmem:[%s2273_s1] sm:$0xff]  ;;  %s1968_s1 = smov [#allocation5]  }
 0x97c   :  { %1665 = vmatmul.f32.vlgmr.msrb.gmra.mxu3 %v1426_v37  ;;  %1686 = vmatpush.msrb.mxu0 %v2234_v0  ;;  %v1784_v8 = vmul.f32 %v59_v6, %v59_v6  ;;  %s1822_s26 = sshll.u32 %s1968_s1, 4  ;;  %s1823_s26 = int_to_ptr.vmem [resolvable:$true] %s1822_s26 }
 0x97d   :  { %1778 = vmatpush.msra.mxu3 %v1617_v46 }
 0x97e   :  { %1689 = vmatpush.msrb.mxu0 %v1653_v12  ;;  %v1785_v46 = vmul.f32 -0.5, %v1784_v8  ;;  %v1797_v14 = vmul.f32 -2.2699965e-05, %v1784_v8 }
 0x980   :  { %1562 = vmatmul.f32.vlgmr.msra.gmra.mxu0 %v1426_v37  ;;  %1722 = vmatmul.f32.vlgmr.msrb.gmra.mxu1 %v1428_v39  ;;  %v1786_v16 = vadd.f32 -2.8160586, %v1785_v46  ;;  %v1798_v18 = vadd.f32 -8.221523, %v1797_v14 }
 0x981   :  { %1692 = vmatpush.msrb.mxu0 %v1659_v17 }
 0x982   :  { %1755 = vmatmul.f32.vlgmr.msra.gmra.mxu2 %v1426_v37 }
 0x984   :  { %1780 = vmatmul.f32.vlgmr.msra.gmra.mxu3 %v1426_v37 }
 0x988   :  { %1695 = vmatmul.f32.vlgmr.msrb.gmra.mxu0 %v1427_v38 }
 0x9ed   :  { %v1473_v41 = vpop.f32.mrf.mxu1 }
 0x9f5   :  { %v1432_v42 = vpop.f32.mrf.mxu0  ;;  %v1503_v43 = vpop.f32.mrf.mxu2 }
 0x9f6   :  { %v1433_v47 = vadd.f32 %v1869_v44, %v1432_v42  ;;  %v1588_v48 = vpop.f32.mrf.mxu1 }
 0x9f7   :  { %v1530_v45 = vpop.f32.mrf.mxu3 }
 0x9f8   :  { %v1474_v52 = vadd.f32 %v1473_v41, %v1433_v47 }
 0x9fa   :  { %v1504_v55 = vadd.f32 %v1503_v43, %v1474_v52 }
 0x9fc   :  { %v1531_v10 = vadd.f32 %v1530_v45, %v1504_v55 }
 0x9fd   :  { %v1563_v50 = vpop.f32.mrf.mxu0  ;;  %v1625_v51 = vpop.f32.mrf.mxu2 }
 0x9fe   :  { %v1626_v53 = vadd.f32 %v1870_v49, %v1625_v51  ;;  %v1723_v59 = vpop.f32.mrf.mxu1  ;;  %v1564_v1 = vadd.f32 %v1563_v50, %v1531_v10 }
 0x9ff   :  { %v1666_v54 = vpop.f32.mrf.mxu3 }
 0xa00   :  { %v1667_v56 = vadd.f32 %v1666_v54, %v1626_v53  ;;  %v1589_v5 = vadd.f32 %v1588_v48, %v1564_v1 }
 0xa02   :  { %v1787_v7 = vsub.f32 %v59_v6, %v1589_v5 }
 0xa04   :  { %v1789_v9 = vmul.f32 %v1787_v7, %v1787_v7 }
 0xa05   :  { %v1696_v57 = vpop.f32.mrf.mxu0  ;;  %v1756_v61 = vpop.f32.mrf.mxu2 }
 0xa06   :  { %v1697_v58 = vadd.f32 %v1696_v57, %v1667_v56 }
 0xa07   :  { %v1781_v2 = vpop.f32.mrf.mxu3 }
 0xa08   :  { %v1724_v60 = vadd.f32 %v1723_v59, %v1697_v58 }
 0xa0a   :  { %v1757_v63 = vadd.f32 %v1756_v61, %v1724_v60 }
 0xa0c   :  { %v1782_v3 = vadd.f32 %v1781_v2, %v1757_v63 }
 0xa0e   :  { %v1790_v4 = vsub.f32 0.0, %v1782_v3  ;;  %v1788_v12 = vadd.f32 1.837877, %v1782_v3 }
 0xa10   :  { %v1791_v0 = vmul.f32 1.442695, %v1790_v4 }
 0xa12   :  { %1903 = vpow2.f32 %v1791_v0 }
 0xa18   :  { %v1904_v11 = vpop.eup %1903 }
 0xa19   :  { %v1793_v13 = vmul.f32 %v1904_v11, %v1789_v9 }
 0xa1b   :  { %v1794_v15 = vadd.f32 %v1793_v13, %v1788_v12 }
 0xa1d   :  { %v1795_v17 = vmul.f32 -0.5, %v1794_v15 }
 0xa1f   :  { %v1796_v19 = vadd.f32 -0.2876821, %v1795_v17 }
 0xa21   :  { %v1799_v20 = vmax.f32 %v1786_v16, %v1796_v19 }
 0xa23   :  { %v1800_v21 = vmax.f32 %v1799_v20, %v1798_v18 }
 0xa25   :  { %v1801_v22 = vsub.f32 %v1786_v16, %v1800_v21  ;;  %v1804_v23 = vsub.f32 %v1796_v19, %v1800_v21  ;;  %v1808_v24 = vsub.f32 %v1798_v18, %v1800_v21 }
 0xa27   :  { %v1802_v25 = vmul.f32 1.442695, %v1801_v22  ;;  %v1805_v26 = vmul.f32 1.442695, %v1804_v23  ;;  %v1809_v27 = vmul.f32 1.442695, %v1808_v24 }
 0xa29   :  { %1905 = vpow2.f32 %v1802_v25 }
 0xa2a   :  { %1907 = vpow2.f32 %v1805_v26 }
 0xa2b   :  { %1909 = vpow2.f32 %v1809_v27 }
 0xa2f   :  { %v1906_v28 = vpop.eup %1905 }
 0xa30   :  { %v1908_v62 = vpop.eup %1907 }
 0xa31   :  { %v1807_v29 = vadd.f32 %v1908_v62, %v1906_v28  ;;  %v1910_v30 = vpop.eup %1909 }
 0xa33   :  { %v1811_v31 = vadd.f32 %v1910_v30, %v1807_v29 }
 0xa35   :  { %1911 = vlog2.f32 %v1811_v31 }
 0xa3b   :  { %v1912_v32 = vpop.eup %1911 }
 0xa3c   :  { %v1813_v34 = vmul.f32 0.6931472, %v1912_v32 }
 0xa3e   :  { %v1814_v35 = vadd.f32 %v1813_v34, %v1800_v21 }
 0xa40   :  { %1816 = vst.msk [vmem:[#allocation5] sm:$0xff] %vm1815_vm8, %v1814_v35 }
 0xa41   :  { %1827 = dma.vmem_to_hbm [thread:$0]  %s1823_s26, 128, %s1825_s5, [#allocation4]  }
 0xa42   :  { %1963 = dma.done.wait [#allocation4], 128  }
 0xa43   :  { %1964 = vsyncadd [#allocation4], 4294967168 }
 0xa44   :  { %1832 = vsyncpa [#allocation3], 1 }
 0xa45   :  { %1833 = vsyncpa [#allocation4], 1 }

</bundles_post_ra>
